<compile_context>
chip_gen: v5e
topology: v5e:2x2
jax: 0.10.0
libtpu: 0.0.40
codegen_flags: <defaults>
</compile_context>

<pallas_src>
import functools
import numpy as np

import jax
import jax.numpy as jnp
from jax import lax
from jax.experimental import pallas as pl
from jax.experimental.pallas import tpu as pltpu


# --------------------------------------------------------------------------
# Generation-aware VMEM budgets
# --------------------------------------------------------------------------
def _vmem_budgets():
    cap = None
    try:
        info = pltpu.get_tpu_info()
        cap = getattr(info, "vmem_capacity_bytes", None)
    except Exception:
        cap = None
    if cap is None:
        cap = 64 * 1024 * 1024                       # conservative default
    if cap >= 128 * 1024 * 1024:                     # v5e / v6e class parts
        return (96 * 1024 * 1024, 40 * 1024 * 1024, 48 * 1024 * 1024)
    return (42 * 1024 * 1024, 15 * 1024 * 1024, 20 * 1024 * 1024)   # v7x class


VMEM_LIMIT, CONV_BUDGET, ROW_BUDGET = _vmem_budgets()


# --------------------------------------------------------------------------
# helpers (trace-time only)
# --------------------------------------------------------------------------
def _round_up(x, m):
    return ((x + m - 1) // m) * m


def _largest_divisor(n, cap, mult=1):
    """Largest divisor of n that is <= cap, preferring multiples of `mult`."""
    if n <= cap:
        return n
    fallback = 1
    for t in range(cap, 0, -1):
        if n % t == 0:
            if t % mult == 0:
                return t
            if fallback == 1:
                fallback = t
    return fallback


def _cin_block(cin):
    if cin % 256 == 0:
        return 256
    if cin % 128 == 0:
        return 128
    return cin


def _cout_block(coutp):
    return 256 if coutp % 256 == 0 else 128


def _choose_th(H, Wp, cin_blk, cout_blk, budget):
    """Largest row-tile TH (divisor of H) whose conv working set fits the budget."""
    w_b = 2 * 9 * cin_blk * cout_blk * 2
    halo_b = 2 * 3 * Wp * cin_blk * 2
    per_row = (2 * Wp * cin_blk * 2 +        # double-buffered bf16 input rows
               2 * Wp * cout_blk * 2 +       # double-buffered bf16 output rows
               3 * Wp * cout_blk * 4 +       # three f32 accumulators
               3 * Wp * cout_blk * 4)        # matmul / epilogue temporaries
    cap = max(1, (budget - w_b - halo_b) // per_row)
    for th in range(min(H, cap), 0, -1):
        if H % th == 0:
            return th
    return 1


def _row_tile(R, C, budget, n_inputs=1):
    """Row tile for (R, C) elementwise / reduction kernels (honest working-set budget)."""
    per_row = (4 * n_inputs + 16) * C
    cap = max(8, budget // per_row)
    if R <= cap:
        return R
    fallback = 1
    for t in range(cap, 0, -1):
        if R % t == 0:
            if t % 8 == 0:
                return t
            if fallback == 1:
                fallback = t
    return fallback


# --------------------------------------------------------------------------
# Pallas kernels
# --------------------------------------------------------------------------
def _matmul_kernel(a_ref, b_ref, o_ref, acc_ref):
    @pl.when(pl.program_id(2) == 0)
    def _():
        acc_ref[...] = jnp.zeros_like(acc_ref)

    acc_ref[...] += jnp.dot(a_ref[...], b_ref[...],
                            preferred_element_type=jnp.float32)

    @pl.when(pl.program_id(2) == pl.num_programs(2) - 1)
    def _():
        o_ref[...] = acc_ref[...].astype(o_ref.dtype)


def _conv3x3_kernel(x_ref, w_ref, o_ref, st_ref, acc0, acc1, acc2,
                    *, th, wp, w_valid):
    """3x3 / stride-1 conv over a halo'd, flattened (rows=(th+3)*wp, Cin) tile.

    All 9 taps read sublane-aligned slices (offsets di*wp, wp % 16 == 0); the three
    per-dj f32 accumulators are combined once per tile with two row-shifted adds.
    The last Cin step also emits masked per-channel (sum, sumsq) statistics.
    """
    k = pl.program_id(2)
    thw = th * wp

    @pl.when(k == 0)
    def _():
        acc0[...] = jnp.zeros_like(acc0)
        acc1[...] = jnp.zeros_like(acc1)
        acc2[...] = jnp.zeros_like(acc2)

    accs = (acc0, acc1, acc2)
    for dj in range(3):
        total = None
        for di in range(3):
            a = x_ref[0, di * wp:di * wp + thw, :]            # aligned view
            p = jnp.dot(a, w_ref[di, dj],
                        preferred_element_type=jnp.float32)
            total = p if total is None else total + p
        accs[dj][0:thw, :] += total

    @pl.when(k == pl.num_programs(2) - 1)
    def _():
        y = acc0[0:thw, :] + acc1[1:thw + 1, :] + acc2[2:thw + 2, :]
        o_ref[0] = y.astype(o_ref.dtype)
        col = lax.broadcasted_iota(jnp.int32, (thw, 1), 0) % wp
        ym = jnp.where(col < w_valid, y, 0.0)
        st_ref[0, 0:1, :] = jnp.sum(ym, axis=0, keepdims=True)
        st_ref[0, 1:2, :] = jnp.sum(ym * ym, axis=0, keepdims=True)


def _stats_kernel(x_ref, o_ref, acc_ref):
    """Per-channel sum / sum-of-squares over the row axis (f32 accumulation)."""
    k = pl.program_id(2)

    @pl.when(k == 0)
    def _():
        acc_ref[...] = jnp.zeros_like(acc_ref)

    x = x_ref[0].astype(jnp.float32)
    acc_ref[0:1, :] += jnp.sum(x, axis=0, keepdims=True)
    acc_ref[1:2, :] += jnp.sum(x * x, axis=0, keepdims=True)

    @pl.when(k == pl.num_programs(2) - 1)
    def _():
        o_ref[0, 0] = acc_ref[...]


def _apply_act(y, act):
    if act == "relu":
        return jnp.maximum(y, 0.0)
    if act == "celu":
        return jnp.where(y > 0, y, jnp.expm1(y))
    return y


def _scale_act_kernel(x_ref, s_ref, b_ref, o_ref, *, act):
    y = x_ref[...].astype(jnp.float32) * s_ref[...] + b_ref[...]
    o_ref[...] = _apply_act(y, act).astype(o_ref.dtype)


def _scale_act_res_kernel(x_ref, r_ref, s_ref, b_ref, o_ref, *, act):
    y = (x_ref[...].astype(jnp.float32) * s_ref[...] + b_ref[...]
         + r_ref[...].astype(jnp.float32))
    o_ref[...] = _apply_act(y, act).astype(o_ref.dtype)


def _scale_act_crop_kernel(x_ref, s_ref, b_ref, o_ref, *, act, w_valid, c_valid):
    """Norm apply on a (rows, Wp, Cp) padded conv output; writes the (W, C) crop."""
    x = x_ref[0, :, 0:w_valid, 0:c_valid].astype(jnp.float32)
    y = x * s_ref[0] + b_ref[0]
    o_ref[0] = _apply_act(y, act).astype(o_ref.dtype)


def _final_conv_kernel(x_ref, w_ref, b_ref, o_ref):
    """num_classes-wide 1x1 conv as a VPU multiply + lane reduce (no MXU, no lane pad)."""
    x = x_ref[...].astype(jnp.float32)                 # (TR, C)
    w = w_ref[...].astype(jnp.float32)                 # (K, C)
    b = b_ref[...]                                     # (1, K)
    cols = []
    for k in range(w.shape[0]):
        cols.append(jnp.sum(x * w[k:k + 1, :], axis=1, keepdims=True)
                    + b[:, k:k + 1])
    o_ref[...] = cols[0] if len(cols) == 1 else jnp.concatenate(cols, axis=1)


# --------------------------------------------------------------------------
# Matmul / conv wrappers
# --------------------------------------------------------------------------
def _matmul(a, b, out_dtype):
    """bf16 x bf16 -> out_dtype, f32 accumulation."""
    M, K = a.shape
    N = b.shape[1]
    small = K <= 128 and N <= 256
    tm_cap = 2048 if small else 512
    tm = _largest_divisor(M, tm_cap, 256)
    if tm % 8 != 0:
        tm = _largest_divisor(M, tm_cap, 8)
    tk = _largest_divisor(K, 512, 256)
    tn = _largest_divisor(N, 512, 256)
    if tn % 128 != 0:
        tn = _largest_divisor(N, 512, 128)
    grid = (M // tm, N // tn, K // tk)
    return pl.pallas_call(
        _matmul_kernel,
        out_shape=jax.ShapeDtypeStruct((M, N), out_dtype),
        grid_spec=pltpu.PrefetchScalarGridSpec(
            num_scalar_prefetch=0,
            grid=grid,
            in_specs=[pl.BlockSpec((tm, tk), lambda i, j, k: (i, k)),
                      pl.BlockSpec((tk, tn), lambda i, j, k: (k, j))],
            out_specs=pl.BlockSpec((tm, tn), lambda i, j, k: (i, j)),
            scratch_shapes=[pltpu.VMEM((tm, tn), jnp.float32)]),
        compiler_params=pltpu.CompilerParams(
            dimension_semantics=("parallel", "parallel", "arbitrary"),
            vmem_limit_bytes=VMEM_LIMIT),
    )(a.astype(jnp.bfloat16), b.astype(jnp.bfloat16))


@functools.partial(jax.jit, static_argnames=("out_dtype",))
def conv1x1(x, w_pt, *, out_dtype=jnp.bfloat16):
    """1x1 conv (bias-free) as a tiled MXU matmul; Cout zero-padded to 128 lanes."""
    N, H, W, Cin = x.shape
    Cout = w_pt.shape[0]
    Coutp = _round_up(Cout, 128)
    wm = jnp.transpose(w_pt.reshape(Cout, Cin), (1, 0)).astype(jnp.bfloat16)
    if Coutp != Cout:
        wm = jnp.pad(wm, ((0, 0), (0, Coutp - Cout)))
    out = _matmul(x.reshape(N * H * W, Cin), wm, out_dtype)
    if Coutp != Cout:
        out = out[:, :Cout]
    return out.reshape(N, H, W, Cout)


@functools.partial(jax.jit, static_argnames=("stride", "padding"))
def conv2d_im2col(x, w_pt, *, stride, padding):
    """Generic conv via im2col + matmul.  Only used for the few small stride-2 convs."""
    N, H, W, Cin = x.shape
    Cout, _, kh, kw = w_pt.shape
    Ho = (H + 2 * padding - kh) // stride + 1
    Wo = (W + 2 * padding - kw) // stride + 1
    if padding > 0:
        x = jnp.pad(x, ((0, 0), (padding, padding), (padding, padding), (0, 0)))
    cols = []
    for i in range(kh):
        for j in range(kw):
            cols.append(x[:, i:i + stride * Ho:stride, j:j + stride * Wo:stride, :])
    patches = cols[0] if len(cols) == 1 else jnp.concatenate(cols, axis=-1)
    K = kh * kw * Cin
    Kp = _round_up(K, 8)
    a = patches.reshape(N * Ho * Wo, K)
    if Kp != K:
        a = jnp.pad(a, ((0, 0), (0, Kp - K)))
    Coutp = _round_up(Cout, 128)
    bm = jnp.transpose(w_pt, (2, 3, 1, 0)).reshape(K, Cout).astype(jnp.bfloat16)
    if Kp != K:
        bm = jnp.pad(bm, ((0, Kp - K), (0, 0)))
    if Coutp != Cout:
        bm = jnp.pad(bm, ((0, 0), (0, Coutp - Cout)))
    out = _matmul(a, bm, jnp.bfloat16)
    if Coutp != Cout:
        out = out[:, :Cout]
    return out.reshape(N, Ho, Wo, Cout)


@functools.partial(jax.jit, static_argnames=("upsample",))
def conv3x3_padded(x, w_pt, *, upsample=False):
    """3x3 / stride 1 / pad 1 conv (optionally fused nearest-2x upsample).

    Returns the raw padded output (N, H, Wp, Coutp) bf16 plus fused per-channel
    (sum, sumsq) statistics (N, 2, Coutp) f32; the column / channel crops are done
    by the following norm-apply kernel.
    """
    N, Hin, Win, Cin = x.shape
    Cout = w_pt.shape[0]
    H, W = (2 * Hin, 2 * Win) if upsample else (Hin, Win)
    Wp = _round_up(W + 2, 16)                    # 16-aligned so di*Wp is bf16-tile aligned
    Coutp = _round_up(Cout, 128)

    cin_blk = _cin_block(Cin)
    cout_blk = _cout_block(Coutp)
    TH = _choose_th(H, Wp, cin_blk, cout_blk, CONV_BUDGET)
    nT = H // TH

    # padded-output-row index for each (tile, local row) of the halo'd windows.
    pr = (jnp.arange(nT)[:, None] * TH + jnp.arange(TH + 3)[None, :]).reshape(-1)
    if upsample:
        rows = jnp.where(pr == 0, 0,
                         jnp.where(pr >= H + 1, Hin + 1, (pr - 1) // 2 + 1))
        xc = jnp.pad(jnp.repeat(x, 2, axis=2),
                     ((0, 0), (1, 1), (1, Wp - W - 1), (0, 0)))
    else:
        rows = pr
        xc = jnp.pad(x, ((0, 0), (1, 2), (1, Wp - W - 1), (0, 0)))
    # TODO(synk): feed the overlapping halo windows straight from HBM with manual
    # DMA instead of materializing this gathered copy (one extra activation pass).
    xt = jnp.take(xc, rows, axis=1).reshape(N * nT, (TH + 3) * Wp, Cin)

    wt = jnp.transpose(w_pt, (2, 3, 1, 0)).astype(jnp.bfloat16)     # (3,3,Cin,Cout)
    if Coutp != Cout:
        wt = jnp.pad(wt, ((0, 0), (0, 0), (0, 0), (0, Coutp - Cout)))

    n_cout = Coutp // cout_blk
    n_cin = Cin // cin_blk
    out, stats = pl.pallas_call(
        functools.partial(_conv3x3_kernel, th=TH, wp=Wp, w_valid=W),
        out_shape=(jax.ShapeDtypeStruct((N * nT, TH * Wp, Coutp), jnp.bfloat16),
                   jax.ShapeDtypeStruct((N * nT, 2, Coutp), jnp.float32)),
        grid_spec=pltpu.PrefetchScalarGridSpec(
            num_scalar_prefetch=0,
            grid=(N * nT, n_cout, n_cin),
            in_specs=[pl.BlockSpec((1, (TH + 3) * Wp, cin_blk),
                                   lambda m, j, k: (m, 0, k)),
                      pl.BlockSpec((3, 3, cin_blk, cout_blk),
                                   lambda m, j, k: (0, 0, k, j))],
            out_specs=[pl.BlockSpec((1, TH * Wp, cout_blk),
                                    lambda m, j, k: (m, 0, j)),
                       pl.BlockSpec((1, 2, cout_blk),
                                    lambda m, j, k: (m, 0, j))],
            scratch_shapes=[pltpu.VMEM((TH * Wp + 8, cout_blk), jnp.float32)] * 3),
        compiler_params=pltpu.CompilerParams(
            dimension_semantics=("parallel", "parallel", "arbitrary"),
            vmem_limit_bytes=VMEM_LIMIT),
    )(xt.astype(jnp.bfloat16), wt)

    xp = out.reshape(N, H, Wp, Coutp)
    st = jnp.sum(stats.reshape(N, nT, 2, Coutp), axis=1)           # (N, 2, Coutp)
    return xp, st


# --------------------------------------------------------------------------
# Normalization on padded conv3x3 outputs (crop + scale/bias + act fused)
# --------------------------------------------------------------------------
def _apply_scale_bias_padded(xp, scale_nc, bias_nc, act, W, C):
    N, H, Wp, Cp = xp.shape
    per_row = Wp * Cp * 4 + W * C * 16
    cap = max(1, ROW_BUDGET // per_row)
    THr = _largest_divisor(H, cap, 1)
    s4 = scale_nc.reshape(N, 1, 1, C).astype(jnp.float32)
    b4 = bias_nc.reshape(N, 1, 1, C).astype(jnp.float32)
    return pl.pallas_call(
        functools.partial(_scale_act_crop_kernel, act=act, w_valid=W, c_valid=C),
        out_shape=jax.ShapeDtypeStruct((N, H, W, C), jnp.bfloat16),
        grid_spec=pltpu.PrefetchScalarGridSpec(
            num_scalar_prefetch=0,
            grid=(N, H // THr),
            in_specs=[pl.BlockSpec((1, THr, Wp, Cp), lambda n, i: (n, i, 0, 0)),
                      pl.BlockSpec((1, 1, 1, C), lambda n, i: (n, 0, 0, 0)),
                      pl.BlockSpec((1, 1, 1, C), lambda n, i: (n, 0, 0, 0))],
            out_specs=pl.BlockSpec((1, THr, W, C), lambda n, i: (n, i, 0, 0))),
        compiler_params=pltpu.CompilerParams(
            dimension_semantics=("parallel", "parallel"),
            vmem_limit_bytes=VMEM_LIMIT),
    )(xp, s4, b4)


@functools.partial(jax.jit, static_argnames=("W", "C", "groups"))
def groupnorm_celu_padded(xp, stats, gamma, beta, *, W, C, groups=16):
    N, H, _, _ = xp.shape
    s = stats[:, 0, :C]
    q = stats[:, 1, :C]
    Cg = C // groups
    sg = jnp.sum(s.reshape(N, groups, Cg), axis=-1)
    qg = jnp.sum(q.reshape(N, groups, Cg), axis=-1)
    cnt = H * W * Cg
    mean_g = sg / cnt
    var_g = jnp.maximum(qg / cnt - mean_g * mean_g, 0.0)
    inv_c = jnp.repeat(lax.rsqrt(var_g + 1e-5), Cg, axis=-1)
    mean_c = jnp.repeat(mean_g, Cg, axis=-1)
    scale = gamma.reshape(1, C).astype(jnp.float32) * inv_c
    bias = beta.reshape(1, C).astype(jnp.float32) - mean_c * scale
    return _apply_scale_bias_padded(xp, scale, bias, "celu", W, C)


@functools.partial(jax.jit, static_argnames=("W", "C", "act"))
def batchnorm_act_padded(xp, stats, gamma, beta, *, W, C, act="relu"):
    N, H, _, _ = xp.shape
    s = jnp.sum(stats[:, 0, :C], axis=0)
    q = jnp.sum(stats[:, 1, :C], axis=0)
    cnt = N * H * W
    mean = s / cnt
    var = jnp.maximum(q / cnt - mean * mean, 0.0)
    scale = gamma.astype(jnp.float32) * lax.rsqrt(var + 1e-5)
    bias = beta.astype(jnp.float32) - mean * scale
    scale = jnp.broadcast_to(scale.reshape(1, C), (N, C))
    bias = jnp.broadcast_to(bias.reshape(1, C), (N, C))
    return _apply_scale_bias_padded(xp, scale, bias, act, W, C)


# --------------------------------------------------------------------------
# Normalization on plain NHWC tensors (stem GN, BN after 1x1 / im2col convs)
# --------------------------------------------------------------------------
def _channel_stats(x3):
    """x3: (Ns, R, C) bf16 -> per-sample per-channel (sum, sumsq) in f32."""
    Ns, R, C = x3.shape
    TR = _row_tile(R, C, ROW_BUDGET)
    nT = R // TR
    P = 2 if (nT % 2 == 0 and nT >= 2) else 1
    nTp = nT // P
    out = pl.pallas_call(
        _stats_kernel,
        out_shape=jax.ShapeDtypeStruct((Ns, P, 2, C), jnp.float32),
        grid_spec=pltpu.PrefetchScalarGridSpec(
            num_scalar_prefetch=0,
            grid=(Ns, P, nTp),
            in_specs=[pl.BlockSpec((1, TR, C),
                                   lambda n, p, i: (n, p * nTp + i, 0))],
            out_specs=pl.BlockSpec((1, 1, 2, C),
                                   lambda n, p, i: (n, p, 0, 0)),
            scratch_shapes=[pltpu.VMEM((2, C), jnp.float32)]),
        compiler_params=pltpu.CompilerParams(
            dimension_semantics=("parallel", "parallel", "arbitrary"),
            vmem_limit_bytes=VMEM_LIMIT),
    )(x3)
    stats = jnp.sum(out, axis=1)                   # (Ns, 2, C)
    return stats[:, 0, :], stats[:, 1, :]


def _apply_scale_bias(x3, scale, bias, act, residual=None):
    """out = act(x * scale + bias [+ residual]); per-channel scale/bias; bf16 out."""
    Ns, R, C = x3.shape
    TR = _row_tile(R, C, ROW_BUDGET, n_inputs=1 if residual is None else 2)
    nT = R // TR
    s3 = scale.reshape(Ns, 1, C).astype(jnp.float32)
    b3 = bias.reshape(Ns, 1, C).astype(jnp.float32)
    x_spec = pl.BlockSpec((1, TR, C), lambda n, i: (n, i, 0))
    v_spec = pl.BlockSpec((1, 1, C), lambda n, i: (n, 0, 0))
    if residual is None:
        kernel = functools.partial(_scale_act_kernel, act=act)
        in_specs = [x_spec, v_spec, v_spec]
        operands = (x3, s3, b3)
    else:
        kernel = functools.partial(_scale_act_res_kernel, act=act)
        in_specs = [x_spec, x_spec, v_spec, v_spec]
        operands = (x3, residual, s3, b3)
    return pl.pallas_call(
        kernel,
        out_shape=jax.ShapeDtypeStruct((Ns, R, C), jnp.bfloat16),
        grid_spec=pltpu.PrefetchScalarGridSpec(
            num_scalar_prefetch=0,
            grid=(Ns, nT),
            in_specs=in_specs,
            out_specs=x_spec),
        compiler_params=pltpu.CompilerParams(
            dimension_semantics=("parallel", "parallel"),
            vmem_limit_bytes=VMEM_LIMIT),
    )(*operands)


@functools.partial(jax.jit, static_argnames=("act",))
def batchnorm_act(x, gamma, beta, residual=None, *, act="none"):
    """Training-mode BatchNorm2d (batch stats) + optional fused residual add + act."""
    N, H, W, C = x.shape
    R = N * H * W
    x3 = x.reshape(1, R, C)
    s, q = _channel_stats(x3)                                  # (1, C)
    mean = s / R
    var = jnp.maximum(q / R - mean * mean, 0.0)
    scale = gamma.reshape(1, C).astype(jnp.float32) * lax.rsqrt(var + 1e-5)
    bias = beta.reshape(1, C).astype(jnp.float32) - mean * scale
    res3 = None if residual is None else residual.reshape(1, R, C)
    out = _apply_scale_bias(x3, scale, bias, act, res3)
    return out.reshape(N, H, W, C)


@functools.partial(jax.jit, static_argnames=("groups",))
def groupnorm_celu(x, gamma, beta, *, groups=16):
    """GroupNorm(groups, C) + CELU, computed directly on the NHWC layout."""
    N, H, W, C = x.shape
    Cg = C // groups
    x3 = x.reshape(N, H * W, C)
    s, q = _channel_stats(x3)                                  # (N, C)
    sg = jnp.sum(s.reshape(N, groups, Cg), axis=-1)
    qg = jnp.sum(q.reshape(N, groups, Cg), axis=-1)
    cnt = H * W * Cg
    mean_g = sg / cnt
    var_g = jnp.maximum(qg / cnt - mean_g * mean_g, 0.0)
    inv_c = jnp.repeat(lax.rsqrt(var_g + 1e-5), Cg, axis=-1)
    mean_c = jnp.repeat(mean_g, Cg, axis=-1)
    scale = gamma.reshape(1, C).astype(jnp.float32) * inv_c
    bias = beta.reshape(1, C).astype(jnp.float32) - mean_c * scale
    out = _apply_scale_bias(x3, scale, bias, "celu")
    return out.reshape(N, H, W, C)


# --------------------------------------------------------------------------
# Final 1x1 conv (num_classes wide) — VPU multiply-reduce kernel
# --------------------------------------------------------------------------
@jax.jit
def final_conv1x1(x, w_pt, b):
    N, H, W, C = x.shape
    K = w_pt.shape[0]
    R = N * H * W
    TR = _largest_divisor(R, 8192, 8)
    w2 = w_pt.reshape(K, C).astype(jnp.float32)
    b2 = b.reshape(1, K).astype(jnp.float32)
    out = pl.pallas_call(
        _final_conv_kernel,
        out_shape=jax.ShapeDtypeStruct((R, K), jnp.float32),
        grid_spec=pltpu.PrefetchScalarGridSpec(
            num_scalar_prefetch=0,
            grid=(R // TR,),
            in_specs=[pl.BlockSpec((TR, C), lambda i: (i, 0)),
                      pl.BlockSpec((K, C), lambda i: (0, 0)),
                      pl.BlockSpec((1, K), lambda i: (0, 0))],
            out_specs=pl.BlockSpec((TR, K), lambda i: (i, 0))),
        compiler_params=pltpu.CompilerParams(
            dimension_semantics=("parallel",),
            vmem_limit_bytes=VMEM_LIMIT),
    )(x.reshape(R, C).astype(jnp.bfloat16), w2, b2)
    return out.reshape(N, H, W, K)


# --------------------------------------------------------------------------
# Pooling glue (plain JAX; cheap)
# --------------------------------------------------------------------------
@jax.jit
def maxpool_3x3_s2_p1(x):
    N, H, W, C = x.shape
    Ho = (H - 1) // 2 + 1
    Wo = (W - 1) // 2 + 1
    xp = jnp.pad(x, ((0, 0), (1, 1), (1, 1), (0, 0)), constant_values=-jnp.inf)
    out = None
    for i in range(3):
        for j in range(3):
            s = xp[:, i:i + 2 * Ho:2, j:j + 2 * Wo:2, :]
            out = s if out is None else jnp.maximum(out, s)
    return out


@jax.jit
def avgpool_7x7_s2(x):
    N, H, W, C = x.shape
    Ho = (H - 7) // 2 + 1
    Wo = (W - 7) // 2 + 1
    acc = jnp.zeros((N, Ho, Wo, C), jnp.float32)
    for i in range(7):
        for j in range(7):
            acc = acc + x[:, i:i + 2 * Ho:2, j:j + 2 * Wo:2, :].astype(jnp.float32)
    return (acc / 49.0).astype(jnp.bfloat16)


# --------------------------------------------------------------------------
# Parameters (deterministic synthetic init)
# --------------------------------------------------------------------------
class ParamFactory:
    def __init__(self, key):
        self._key = key
        self._n = 0

    def normal(self, shape, scale):
        k = jax.random.fold_in(self._key, self._n)
        self._n += 1
        return scale * jax.random.normal(k, shape, dtype=jnp.float32)


def build_params(key, input_channels=3, num_filters=32, num_classes=1):
    pf = ParamFactory(key)

    def conv_w(cout, cin, k):
        return pf.normal((cout, cin, k, k), 1.0 / np.sqrt(cin * k * k))

    def norm_p(c):  # weight=1, bias=0 (PyTorch default affine init)
        return (jnp.ones((c,), jnp.float32), jnp.zeros((c,), jnp.float32))

    def bottleneck_p(inplanes, planes, stride, downsample):
        p = {"stride": stride,
             "conv1": conv_w(planes, inplanes, 1), "bn1": norm_p(planes),
             "conv2": conv_w(planes, planes, 3),   "bn2": norm_p(planes),
             "conv3": conv_w(planes * 4, planes, 1), "bn3": norm_p(planes * 4)}
        if downsample:
            p["ds_conv"] = conv_w(planes * 4, inplanes, 1)
            p["ds_bn"] = norm_p(planes * 4)
        return p

    def resnet_layer_p(inplanes, planes, blocks, stride):
        ps = [bottleneck_p(inplanes, planes, stride, True)]
        for _ in range(blocks - 1):
            ps.append(bottleneck_p(planes * 4, planes, 1, False))
        return ps

    def ceg_p(cin, cout):
        return {"conv": conv_w(cout, cin, 3), "gn": norm_p(cout)}

    def up_p(cin, cmid, cout):
        return {"c1": ceg_p(cin, cmid), "c2": ceg_p(cmid, cout)}

    nf = num_filters
    return {
        "l1_conv": conv_w(64, input_channels, 3),
        "l1_gn": norm_p(64),
        "layer2": resnet_layer_p(64, 64, 3, 1),      # ResNet-101 layer1 (x3)
        "layer3": resnet_layer_p(256, 128, 4, 2),    # layer2 (x4)
        "layer4": resnet_layer_p(512, 256, 23, 2),   # layer3 (x23)
        "layer5": resnet_layer_p(1024, 512, 3, 2),   # layer4 (x3)
        "dec6": [up_p(2048, nf * 8, nf * 8), up_p(nf * 8, nf * 8, nf * 8)],
        "dec5": up_p(2048 + nf * 8, nf * 8, nf * 8),
        "dec4": up_p(1024 + nf * 8, nf * 8, nf * 8),
        "dec3": up_p(512 + nf * 8, nf * 8, nf * 8),
        "dec2": [ceg_p(256 + nf * 8, nf * 8), ceg_p(nf * 8, nf * 2)],
        "dec1": [up_p(64 + nf * 2, nf * 2, nf * 2), up_p(nf * 2, nf, nf)],
        "final_w": conv_w(num_classes, nf, 1),
        "final_b": jnp.zeros((num_classes,), jnp.float32),
    }


# --------------------------------------------------------------------------
# Forward pass
# --------------------------------------------------------------------------
def bottleneck_forward(x, p):
    out = conv1x1(x, p["conv1"])
    out = batchnorm_act(out, *p["bn1"], act="relu")
    if p["stride"] == 1:
        w2 = out.shape[2]
        xp, st = conv3x3_padded(out, p["conv2"])
        out = batchnorm_act_padded(xp, st, *p["bn2"],
                                   W=w2, C=p["conv2"].shape[0], act="relu")
    else:
        out = conv2d_im2col(out, p["conv2"], stride=p["stride"], padding=1)
        out = batchnorm_act(out, *p["bn2"], act="relu")
    out = conv1x1(out, p["conv3"])
    if "ds_conv" in p:
        xi = x if p["stride"] == 1 else x[:, ::p["stride"], ::p["stride"], :]
        identity = conv1x1(xi, p["ds_conv"])
        identity = batchnorm_act(identity, *p["ds_bn"], act="none")
    else:
        identity = x
    # bn3 + residual add + ReLU fused in one Pallas apply kernel
    return batchnorm_act(out, *p["bn3"], identity, act="relu")


def ceg_forward(x, p, upsample=False):
    w_out = x.shape[2] * (2 if upsample else 1)
    c_out = p["conv"].shape[0]
    xp, st = conv3x3_padded(x, p["conv"], upsample=upsample)
    return groupnorm_celu_padded(xp, st, *p["gn"], W=w_out, C=c_out, groups=16)


def upsample_layer_forward(x, p):
    x = ceg_forward(x, p["c1"], upsample=True)   # nearest-2x folded into the conv gather
    return ceg_forward(x, p["c2"], upsample=False)


def forward(x_nchw, P):
    x = jnp.transpose(x_nchw, (0, 2, 3, 1)).astype(jnp.bfloat16)   # NCHW -> NHWC bf16

    # layer1: Conv(3x3, s2) -> GroupNorm -> CELU -> MaxPool(3, s2, p1)
    t = conv2d_im2col(x, P["l1_conv"], stride=2, padding=1)
    t = groupnorm_celu(t, *P["l1_gn"], groups=16)
    conv1 = maxpool_3x3_s2_p1(t)

    h = conv1
    for bp in P["layer2"]:
        h = bottleneck_forward(h, bp)
    conv2_ = h
    for bp in P["layer3"]:
        h = bottleneck_forward(h, bp)
    conv3_ = h
    for bp in P["layer4"]:
        h = bottleneck_forward(h, bp)
    conv4_ = h
    for bp in P["layer5"]:
        h = bottleneck_forward(h, bp)
    conv5_ = h

    out = avgpool_7x7_s2(conv5_)                      # layer6

    d = out
    for up in P["dec6"]:
        d = upsample_layer_forward(d, up)
    dec6 = d
    dec5 = upsample_layer_forward(jnp.concatenate([dec6, conv5_], axis=-1), P["dec5"])
    dec4 = upsample_layer_forward(jnp.concatenate([dec5, conv4_], axis=-1), P["dec4"])
    dec3 = upsample_layer_forward(jnp.concatenate([dec4, conv3_], axis=-1), P["dec3"])
    d = jnp.concatenate([dec3, conv2_], axis=-1)
    for cp in P["dec2"]:
        d = ceg_forward(d, cp)
    dec2 = d
    d = jnp.concatenate([dec2, conv1], axis=-1)
    for up in P["dec1"]:
        d = upsample_layer_forward(d, up)
    dec1 = d

    y = final_conv1x1(dec1, P["final_w"], P["final_b"])
    return jnp.transpose(y, (0, 3, 1, 2))             # NHWC -> NCHW


# --------------------------------------------------------------------------
if __name__ == "__main__":
    key = jax.random.PRNGKey(0)
    params = build_params(key, input_channels=3, num_filters=32, num_classes=1)
    # Smallest spatial size consistent with the architecture is 384x384.
    x = jax.random.normal(jax.random.fold_in(key, 9999), (1, 3, 384, 384),
                          dtype=jnp.float32)
    out = forward(x, params)
    out = jax.block_until_ready(out)
    assert out.shape == (1, 1, 384, 384), out.shape
    assert bool(jnp.all(jnp.isfinite(out)))
    print("KERNEL_OK")
</pallas_src>

<mosaic_0001>
module attributes {stable_mosaic.version = 11 : i64} {
  func.func @_matmul_kernel(%arg0: i32, %arg1: i32, %arg2: i32, %arg3: memref<2048x32xbf16, #tpu.memory_space<vmem>>, %arg4: memref<32x128xbf16, #tpu.memory_space<vmem>>, %arg5: memref<2048x128xbf16, #tpu.memory_space<vmem>>, %arg6: memref<2048x128xf32, #tpu.memory_space<vmem>>) attributes {dimension_semantics = [#tpu.dimension_semantics<parallel>, #tpu.dimension_semantics<parallel>, #tpu.dimension_semantics<arbitrary>], iteration_bounds = array<i64: 18, 1, 1>, scalar_prefetch = 0 : i64, scratch_operands = 1 : i64, tpu.core_type = #tpu.core_type<tc>, window_params = [{transform_indices = @transform_0, window_bounds = array<i64: 2048, 32>}, {transform_indices = @transform_1, window_bounds = array<i64: 32, 128>}, {transform_indices = @transform_2, window_bounds = array<i64: 2048, 128>}]} {
    %c0_i32 = arith.constant 0 : i32
    %0 = arith.cmpi eq, %arg2, %c0_i32 : i32
    %1 = arith.extui %0 : i1 to i32
    %c0_i32_0 = arith.constant 0 : i32
    %2 = arith.cmpi ne, %1, %c0_i32_0 : i32
    scf.if %2 {
      %cst_10 = arith.constant 0.000000e+00 : f32
      %12 = vector.broadcast %cst_10 : f32 to vector<2048x128xf32>
      %c0_11 = arith.constant 0 : index
      %c0_12 = arith.constant 0 : index
      %13 = vector.load %arg6[%c0_11, %c0_12] : memref<2048x128xf32, #tpu.memory_space<vmem>>, vector<2048x128xf32>
      tpu.vector_store %arg6[%c0_11, %c0_12], %12 {strides = array<i32>} : memref<2048x128xf32, #tpu.memory_space<vmem>>, vector<2048x128xf32>,
    } else {
    }
    %c0 = arith.constant 0 : index
    %c0_1 = arith.constant 0 : index
    %3 = vector.load %arg6[%c0, %c0_1] : memref<2048x128xf32, #tpu.memory_space<vmem>>, vector<2048x128xf32>
    %c0_2 = arith.constant 0 : index
    %c0_3 = arith.constant 0 : index
    %4 = vector.load %arg3[%c0_2, %c0_3] : memref<2048x32xbf16, #tpu.memory_space<vmem>>, vector<2048x32xbf16>
    %c0_4 = arith.constant 0 : index
    %c0_5 = arith.constant 0 : index
    %5 = vector.load %arg4[%c0_4, %c0_5] : memref<32x128xbf16, #tpu.memory_space<vmem>>, vector<32x128xbf16>
    %cst = arith.constant dense<0.000000e+00> : vector<2048x128xf32>
    %6 = tpu.matmul %4, %5, %cst {dimension_numbers = #tpu.dot_dimension_numbers<[1], [0], [0], [1], [0, 0, 1, 1], [], []>} : vector<2048x32xbf16>, vector<32x128xbf16>, vector<2048x128xf32> -> vector<2048x128xf32>
    %7 = arith.addf %3, %6 : vector<2048x128xf32>
    %c0_6 = arith.constant 0 : index
    %c0_7 = arith.constant 0 : index
    %8 = vector.load %arg6[%c0_6, %c0_7] : memref<2048x128xf32, #tpu.memory_space<vmem>>, vector<2048x128xf32>
    tpu.vector_store %arg6[%c0_6, %c0_7], %7 {strides = array<i32>} : memref<2048x128xf32, #tpu.memory_space<vmem>>, vector<2048x128xf32>,
    %c0_i32_8 = arith.constant 0 : i32
    %9 = arith.cmpi eq, %arg2, %c0_i32_8 : i32
    %10 = arith.extui %9 : i1 to i32
    %c0_i32_9 = arith.constant 0 : i32
    %11 = arith.cmpi ne, %10, %c0_i32_9 : i32
    scf.if %11 {
      %c0_10 = arith.constant 0 : index
      %c0_11 = arith.constant 0 : index
      %12 = vector.load %arg6[%c0_10, %c0_11] : memref<2048x128xf32, #tpu.memory_space<vmem>>, vector<2048x128xf32>
      %13 = arith.truncf %12 : vector<2048x128xf32> to vector<2048x128xbf16>
      %c0_12 = arith.constant 0 : index
      %c0_13 = arith.constant 0 : index
      %14 = vector.load %arg5[%c0_12, %c0_13] : memref<2048x128xbf16, #tpu.memory_space<vmem>>, vector<2048x128xbf16>
      tpu.vector_store %arg5[%c0_12, %c0_13], %13 {strides = array<i32>} : memref<2048x128xbf16, #tpu.memory_space<vmem>>, vector<2048x128xbf16>,
    } else {
    }
    return
  }
  func.func @transform_0(%arg0: i32, %arg1: i32, %arg2: i32) -> (i32, i32) {
    %c0_i32 = arith.constant 0 : i32
    return %arg0, %arg2 : i32, i32
  }
  func.func @transform_1(%arg0: i32, %arg1: i32, %arg2: i32) -> (i32, i32) {
    %c0_i32 = arith.constant 0 : i32
    return %arg2, %arg1 : i32, i32
  }
  func.func @transform_2(%arg0: i32, %arg1: i32, %arg2: i32) -> (i32, i32) {
    %c0_i32 = arith.constant 0 : i32
    return %arg0, %arg1 : i32, i32
  }
}

</mosaic_0001>

<bundles_post_ra>
// kernel: conv2d_im2col.1
= control target key start
LH: loop header
LB: loop body
LE: loop exit
PB: predicated region body
PF: predicated region fallthrough
CT: control target
= control target key end

     0   :  { %s5689_s9 = smov 0   ;;  %s5691_s10 = smov 0   ;;  %s6123_s0 = inlined_call_operand.vmem [shape: bf16[36864,32], index: 0, kind: input, shape index: {}]   ;;  %s6124_s1 = inlined_call_operand.vmem [shape: bf16[32,128], index: 1, kind: input, shape index: {}]   ;;  %s6125_s2 = inlined_call_operand.vmem [shape: bf16[36864,128], index: 2, kind: output, shape index: {}]  }
   0x1   :  { %s5693_s11 = smov 0  }
   0x2 LB: > { %s31_s12 = sadd.s32 1, %s5668_s10  ;;  %p4068_p0 = scmp.ge.s32.totalorder %s5672_s11, 1  ;;  %s5672_s11 = sphi %s5693_s11, %s12_s11   ;;  %s5668_s10 = sphi %s5691_s10, %s6127_s10   ;;  %s5664_s9 = sphi %s5689_s9, %s6126_s9  }
   0x3   : > { %p33_p1 = scmp.ge.s32.totalorder %s31_s12, 18  ;;  %p155_p2 = scmp.lt.s32.totalorder %s5672_s11, 19 }
   0x5   : > { %s6129_s12 = smov (%p33_p1, %s31_s12), 0  ;;  %p156_p3 = pnand %p4068_p0, %p155_p2 }
   0x6   : > { %s4069_s15 = sshll.u32 (!%p156_p3), %s5664_s9, 8 }
   0x7   : > { %159 = sbr.rel (%p156_p3) target bundleno = 661 (0x295), region = 28  ;;  %p192_p4 = scmp.lt.s32.totalorder (!%p156_p3), %s4069_s15, 4607 }
   0xc   : > { %v4852_v0 = vld [vmem:[%s6124_s1 + $0x8] sm:$0xff]  ;;  %v4851_v1 = vld [vmem:[%s6124_s1] sm:$0xff]  ;;  %s6131_s15 = smov (!%p192_p4, %s4069_s15), 4607  ;;  %vm1647_vm0 = vcmask 261120  }
   0xd   : > { %2038 = vmatpush.bf16.msra.mxu0 %v4852_v0  ;;  %5620 = vmatpush.bf16.msra.mxu1 %v4852_v0  ;;  %s4070_s18 = sshll.u32 %s6131_s15, 2 }
   0xe   : > { %5621 = vmatpush.bf16.msra.mxu2 %v4852_v0  ;;  %5622 = vmatpush.bf16.msra.mxu3 %v4852_v0  ;;  %s5721_s21 = scalar_lea.vmem %s6123_s0, %s4070_s18  ;;  %s5800_s24 = scalar_lea.vmem %s6125_s2, %s4070_s18 }
   0xf   : > { %v4723_v2 = vld [vmem:[%s5721_s21] sm:$0xff]  ;;  %v4724_v6 = vld [vmem:[%s5721_s21 + $0x8] sm:$0xff]  ;;  %v4725_v10 = vld [vmem:[%s5721_s21 + $0x10] sm:$0xff] }
  0x10   : > { %v4755_v3 = vld [vmem:[%s5721_s21 + $0x100] sm:$0xff]  ;;  %v4756_v7 = vld [vmem:[%s5721_s21 + $0x108] sm:$0xff]  ;;  %v4757_v11 = vld [vmem:[%s5721_s21 + $0x110] sm:$0xff] }
  0x11   : > { %2039 = vmatpush.bf16.msra.mxu0 %v4851_v1  ;;  %5623 = vmatpush.bf16.msra.mxu1 %v4851_v1  ;;  %v4787_v4 = vld [vmem:[%s5721_s21 + $0x200] sm:$0xff]  ;;  %v4788_v8 = vld [vmem:[%s5721_s21 + $0x208] sm:$0xff]  ;;  %v4789_v12 = vld [vmem:[%s5721_s21 + $0x210] sm:$0xff] }
  0x12   : > { %5624 = vmatpush.bf16.msra.mxu2 %v4851_v1  ;;  %5625 = vmatpush.bf16.msra.mxu3 %v4851_v1  ;;  %v4819_v5 = vld [vmem:[%s5721_s21 + $0x300] sm:$0xff]  ;;  %v4820_v9 = vld [vmem:[%s5721_s21 + $0x308] sm:$0xff]  ;;  %v4821_v13 = vld [vmem:[%s5721_s21 + $0x310] sm:$0xff] }
  0x13   : > { %v4726_v14 = vld [vmem:[%s5721_s21 + $0x18] sm:$0xff]  ;;  %v4727_v18 = vld [vmem:[%s5721_s21 + $0x20] sm:$0xff]  ;;  %v4728_v22 = vld [vmem:[%s5721_s21 + $0x28] sm:$0xff] }
  0x14   : > { %4593 = vmatmul.msk.bf16.vlgmr.msra.gmra.mxu0 %vm1647_vm0, %v4723_v2  ;;  %4625 = vmatmul.msk.bf16.vlgmr.msra.gmra.mxu1 %vm1647_vm0, %v4755_v3  ;;  %v4758_v15 = vld [vmem:[%s5721_s21 + $0x118] sm:$0xff]  ;;  %v4759_v19 = vld [vmem:[%s5721_s21 + $0x120] sm:$0xff]  ;;  %v4760_v23 = vld [vmem:[%s5721_s21 + $0x128] sm:$0xff] }
  0x15   : > { %4657 = vmatmul.msk.bf16.vlgmr.msra.gmra.mxu2 %vm1647_vm0, %v4787_v4  ;;  %4689 = vmatmul.msk.bf16.vlgmr.msra.gmra.mxu3 %vm1647_vm0, %v4819_v5  ;;  %v4790_v16 = vld [vmem:[%s5721_s21 + $0x218] sm:$0xff]  ;;  %v4791_v20 = vld [vmem:[%s5721_s21 + $0x220] sm:$0xff]  ;;  %v4792_v24 = vld [vmem:[%s5721_s21 + $0x228] sm:$0xff] }
  0x16   : > { %v4822_v17 = vld [vmem:[%s5721_s21 + $0x318] sm:$0xff]  ;;  %v4823_v21 = vld [vmem:[%s5721_s21 + $0x320] sm:$0xff]  ;;  %v4824_v25 = vld [vmem:[%s5721_s21 + $0x328] sm:$0xff] }
  0x17   : > { %v4729_v26 = vld [vmem:[%s5721_s21 + $0x30] sm:$0xff]  ;;  %v4730_v30 = vld [vmem:[%s5721_s21 + $0x38] sm:$0xff]  ;;  %v4731_v34 = vld [vmem:[%s5721_s21 + $0x40] sm:$0xff] }
  0x18   : > { %v4761_v27 = vld [vmem:[%s5721_s21 + $0x130] sm:$0xff]  ;;  %v4762_v31 = vld [vmem:[%s5721_s21 + $0x138] sm:$0xff]  ;;  %v4763_v35 = vld [vmem:[%s5721_s21 + $0x140] sm:$0xff] }
  0x19   : > { %v4793_v28 = vld [vmem:[%s5721_s21 + $0x230] sm:$0xff]  ;;  %v4794_v32 = vld [vmem:[%s5721_s21 + $0x238] sm:$0xff]  ;;  %v4795_v38 = vld [vmem:[%s5721_s21 + $0x240] sm:$0xff] }
  0x1a   : > { %v4825_v29 = vld [vmem:[%s5721_s21 + $0x330] sm:$0xff]  ;;  %v4826_v33 = vld [vmem:[%s5721_s21 + $0x338] sm:$0xff]  ;;  %v4827_v39 = vld [vmem:[%s5721_s21 + $0x340] sm:$0xff] }
  0x1b   : > { %v4732_v48 = vld [vmem:[%s5721_s21 + $0x48] sm:$0xff]  ;;  %v4733_v0 = vld [vmem:[%s5721_s21 + $0x50] sm:$0xff] }
  0x1c   : > { %v4764_v49 = vld [vmem:[%s5721_s21 + $0x148] sm:$0xff]  ;;  %v4765_v1 = vld [vmem:[%s5721_s21 + $0x150] sm:$0xff] }
  0x1d   : > { %v4796_v54 = vld [vmem:[%s5721_s21 + $0x248] sm:$0xff] }
  0x1e   : > { %v4828_v55 = vld [vmem:[%s5721_s21 + $0x348] sm:$0xff] }
  0x24   : > { %4594 = vmatmul.msk.bf16.gmra.mxu0 %vm1647_vm0, %v4724_v6  ;;  %4626 = vmatmul.msk.bf16.gmra.mxu1 %vm1647_vm0, %v4756_v7  ;;  %v4797_v6 = vld [vmem:[%s5721_s21 + $0x250] sm:$0xff] }
  0x25   : > { %4658 = vmatmul.msk.bf16.gmra.mxu2 %vm1647_vm0, %v4788_v8  ;;  %4690 = vmatmul.msk.bf16.gmra.mxu3 %vm1647_vm0, %v4820_v9  ;;  %v4829_v7 = vld [vmem:[%s5721_s21 + $0x350] sm:$0xff] }
  0x34   : > { %4595 = vmatmul.msk.bf16.gmra.mxu0 %vm1647_vm0, %v4725_v10  ;;  %4627 = vmatmul.msk.bf16.gmra.mxu1 %vm1647_vm0, %v4757_v11 }
  0x35   : > { %4659 = vmatmul.msk.bf16.gmra.mxu2 %vm1647_vm0, %v4789_v12  ;;  %4691 = vmatmul.msk.bf16.gmra.mxu3 %vm1647_vm0, %v4821_v13 }
  0x44   : > { %4596 = vmatmul.msk.bf16.gmra.mxu0 %vm1647_vm0, %v4726_v14  ;;  %4628 = vmatmul.msk.bf16.gmra.mxu1 %vm1647_vm0, %v4758_v15 }
  0x45   : > { %4660 = vmatmul.msk.bf16.gmra.mxu2 %vm1647_vm0, %v4790_v16  ;;  %4692 = vmatmul.msk.bf16.gmra.mxu3 %vm1647_vm0, %v4822_v17  ;;  %v4734_v16 = vld [vmem:[%s5721_s21 + $0x58] sm:$0xff] }
  0x46   : > { %v4766_v17 = vld [vmem:[%s5721_s21 + $0x158] sm:$0xff] }
  0x54   : > { %4597 = vmatmul.msk.bf16.gmra.mxu0 %vm1647_vm0, %v4727_v18  ;;  %4629 = vmatmul.msk.bf16.gmra.mxu1 %vm1647_vm0, %v4759_v19 }
  0x55   : > { %4661 = vmatmul.msk.bf16.gmra.mxu2 %vm1647_vm0, %v4791_v20  ;;  %4693 = vmatmul.msk.bf16.gmra.mxu3 %vm1647_vm0, %v4823_v21 }
  0x64   : > { %4598 = vmatmul.msk.bf16.gmra.mxu0 %vm1647_vm0, %v4728_v22  ;;  %4630 = vmatmul.msk.bf16.gmra.mxu1 %vm1647_vm0, %v4760_v23  ;;  %v4798_v22 = vld [vmem:[%s5721_s21 + $0x258] sm:$0xff] }
  0x65   : > { %4662 = vmatmul.msk.bf16.gmra.mxu2 %vm1647_vm0, %v4792_v24  ;;  %4694 = vmatmul.msk.bf16.gmra.mxu3 %vm1647_vm0, %v4824_v25  ;;  %v4830_v23 = vld [vmem:[%s5721_s21 + $0x358] sm:$0xff] }
  0x74   : > { %4599 = vmatmul.msk.bf16.gmra.mxu0 %vm1647_vm0, %v4729_v26  ;;  %4631 = vmatmul.msk.bf16.gmra.mxu1 %vm1647_vm0, %v4761_v27 }
  0x75   : > { %4663 = vmatmul.msk.bf16.gmra.mxu2 %vm1647_vm0, %v4793_v28  ;;  %4695 = vmatmul.msk.bf16.gmra.mxu3 %vm1647_vm0, %v4825_v29 }
  0x84   : > { %4600 = vmatmul.msk.bf16.gmra.mxu0 %vm1647_vm0, %v4730_v30  ;;  %4632 = vmatmul.msk.bf16.gmra.mxu1 %vm1647_vm0, %v4762_v31 }
  0x85   : > { %4664 = vmatmul.msk.bf16.gmra.mxu2 %vm1647_vm0, %v4794_v32  ;;  %4696 = vmatmul.msk.bf16.gmra.mxu3 %vm1647_vm0, %v4826_v33  ;;  %v4735_v32 = vld [vmem:[%s5721_s21 + $0x60] sm:$0xff] }
  0x86   : > { %v4767_v33 = vld [vmem:[%s5721_s21 + $0x160] sm:$0xff] }
  0x91   : > { %v2041_v36 = vpop.f32.mrf.mxu0  ;;  %v2201_v37 = vpop.f32.mrf.mxu1 }
  0x94   : > { %4601 = vmatmul.msk.bf16.gmra.mxu0 %vm1647_vm0, %v4731_v34  ;;  %4633 = vmatmul.msk.bf16.gmra.mxu1 %vm1647_vm0, %v4763_v35 }
  0x95   : > { %4665 = vmatmul.msk.bf16.gmra.mxu2 %vm1647_vm0, %v4795_v38  ;;  %4697 = vmatmul.msk.bf16.gmra.mxu3 %vm1647_vm0, %v4827_v39  ;;  %v4799_v38 = vld [vmem:[%s5721_s21 + $0x260] sm:$0xff] }
  0x96   : > { %v4831_v39 = vld [vmem:[%s5721_s21 + $0x360] sm:$0xff] }
  0x98   : > { %v2361_v40 = vpop.f32.mrf.mxu2  ;;  %v2521_v41 = vpop.f32.mrf.mxu3 }
  0x99   : > { %v2043_v42 = vpop.f32.mrf.mxu0  ;;  %v2203_v43 = vpop.f32.mrf.mxu1 }
  0x9a   : > { %v4856_v44 = vpack.c.bf16 %v2043_v42, %v2041_v36  ;;  %v5016_v45 = vpack.c.bf16 %v2203_v43, %v2201_v37 }
  0x9c   : > { %4857 = vst [vmem:[%s5800_s24] sm:$0xff] %v4856_v44  }
  0x9d   : > { %5524 = vst [vmem:[%s5800_s24 + $0x100] sm:$0xff] %v5016_v45  }
  0xa0   : > { %v2363_v46 = vpop.f32.mrf.mxu2  ;;  %v2523_v47 = vpop.f32.mrf.mxu3 }
  0xa1   : > { %v5176_v50 = vpack.c.bf16 %v2363_v46, %v2361_v40  ;;  %v5336_v51 = vpack.c.bf16 %v2523_v47, %v2521_v41  ;;  %v2046_v52 = vpop.f32.mrf.mxu0  ;;  %v2206_v53 = vpop.f32.mrf.mxu1 }
  0xa3   : > { %5556 = vst [vmem:[%s5800_s24 + $0x200] sm:$0xff] %v5176_v50  }
  0xa4   : > { %5588 = vst [vmem:[%s5800_s24 + $0x300] sm:$0xff] %v5336_v51   ;;  %4602 = vmatmul.msk.bf16.gmra.mxu0 %vm1647_vm0, %v4732_v48  ;;  %4634 = vmatmul.msk.bf16.gmra.mxu1 %vm1647_vm0, %v4764_v49  ;;  %v4736_v48 = vld [vmem:[%s5721_s21 + $0x68] sm:$0xff] }
  0xa5   : > { %4666 = vmatmul.msk.bf16.gmra.mxu2 %vm1647_vm0, %v4796_v54  ;;  %4698 = vmatmul.msk.bf16.gmra.mxu3 %vm1647_vm0, %v4828_v55  ;;  %v4768_v49 = vld [vmem:[%s5721_s21 + $0x168] sm:$0xff] }
  0xa6   : > { %v4800_v54 = vld [vmem:[%s5721_s21 + $0x268] sm:$0xff] }
  0xa7   : > { %v4832_v55 = vld [vmem:[%s5721_s21 + $0x368] sm:$0xff] }
  0xa8   : > { %v2366_v56 = vpop.f32.mrf.mxu2  ;;  %v2526_v57 = vpop.f32.mrf.mxu3 }
  0xa9   : > { %v2048_v58 = vpop.f32.mrf.mxu0  ;;  %v2208_v59 = vpop.f32.mrf.mxu1 }
  0xaa   : > { %v4861_v60 = vpack.c.bf16 %v2048_v58, %v2046_v52  ;;  %v5021_v61 = vpack.c.bf16 %v2208_v59, %v2206_v53 }
  0xac   : > { %5493 = vst [vmem:[%s5800_s24 + $0x8] sm:$0xff] %v4861_v60  }
  0xad   : > { %5525 = vst [vmem:[%s5800_s24 + $0x108] sm:$0xff] %v5021_v61  }
  0xb0   : > { %v2368_v62 = vpop.f32.mrf.mxu2  ;;  %v2528_v63 = vpop.f32.mrf.mxu3 }
  0xb1   : > { %v5181_v2 = vpack.c.bf16 %v2368_v62, %v2366_v56  ;;  %v5341_v3 = vpack.c.bf16 %v2528_v63, %v2526_v57  ;;  %v2051_v4 = vpop.f32.mrf.mxu0  ;;  %v2211_v5 = vpop.f32.mrf.mxu1 }
  0xb3   : > { %5557 = vst [vmem:[%s5800_s24 + $0x208] sm:$0xff] %v5181_v2  }
  0xb4   : > { %5589 = vst [vmem:[%s5800_s24 + $0x308] sm:$0xff] %v5341_v3   ;;  %4603 = vmatmul.msk.bf16.gmra.mxu0 %vm1647_vm0, %v4733_v0  ;;  %4635 = vmatmul.msk.bf16.gmra.mxu1 %vm1647_vm0, %v4765_v1  ;;  %v4737_v0 = vld [vmem:[%s5721_s21 + $0x70] sm:$0xff] }
  0xb5   : > { %4667 = vmatmul.msk.bf16.gmra.mxu2 %vm1647_vm0, %v4797_v6  ;;  %4699 = vmatmul.msk.bf16.gmra.mxu3 %vm1647_vm0, %v4829_v7  ;;  %v4769_v1 = vld [vmem:[%s5721_s21 + $0x170] sm:$0xff] }
  0xb6   : > { %v4801_v6 = vld [vmem:[%s5721_s21 + $0x270] sm:$0xff] }
  0xb7   : > { %v4833_v7 = vld [vmem:[%s5721_s21 + $0x370] sm:$0xff] }
  0xb8   : > { %v2371_v8 = vpop.f32.mrf.mxu2  ;;  %v2531_v9 = vpop.f32.mrf.mxu3 }
  0xb9   : > { %v2053_v10 = vpop.f32.mrf.mxu0  ;;  %v2213_v11 = vpop.f32.mrf.mxu1 }
  0xba   : > { %v4866_v12 = vpack.c.bf16 %v2053_v10, %v2051_v4  ;;  %v5026_v13 = vpack.c.bf16 %v2213_v11, %v2211_v5 }
  0xbc   : > { %5494 = vst [vmem:[%s5800_s24 + $0x10] sm:$0xff] %v4866_v12  }
  0xbd   : > { %5526 = vst [vmem:[%s5800_s24 + $0x110] sm:$0xff] %v5026_v13  }
  0xc0   : > { %v2373_v14 = vpop.f32.mrf.mxu2  ;;  %v2533_v15 = vpop.f32.mrf.mxu3 }
  0xc1   : > { %v5186_v18 = vpack.c.bf16 %v2373_v14, %v2371_v8  ;;  %v5346_v19 = vpack.c.bf16 %v2533_v15, %v2531_v9  ;;  %v2056_v20 = vpop.f32.mrf.mxu0  ;;  %v2216_v21 = vpop.f32.mrf.mxu1 }
  0xc3   : > { %5558 = vst [vmem:[%s5800_s24 + $0x210] sm:$0xff] %v5186_v18  }
  0xc4   : > { %5590 = vst [vmem:[%s5800_s24 + $0x310] sm:$0xff] %v5346_v19   ;;  %4604 = vmatmul.msk.bf16.gmra.mxu0 %vm1647_vm0, %v4734_v16  ;;  %4636 = vmatmul.msk.bf16.gmra.mxu1 %vm1647_vm0, %v4766_v17  ;;  %v4738_v16 = vld [vmem:[%s5721_s21 + $0x78] sm:$0xff] }
  0xc5   : > { %4668 = vmatmul.msk.bf16.gmra.mxu2 %vm1647_vm0, %v4798_v22  ;;  %4700 = vmatmul.msk.bf16.gmra.mxu3 %vm1647_vm0, %v4830_v23  ;;  %v4770_v17 = vld [vmem:[%s5721_s21 + $0x178] sm:$0xff] }
  0xc6   : > { %v4802_v22 = vld [vmem:[%s5721_s21 + $0x278] sm:$0xff] }
  0xc7   : > { %v4834_v23 = vld [vmem:[%s5721_s21 + $0x378] sm:$0xff] }
  0xc8   : > { %v2376_v24 = vpop.f32.mrf.mxu2  ;;  %v2536_v25 = vpop.f32.mrf.mxu3 }
  0xc9   : > { %v2058_v26 = vpop.f32.mrf.mxu0  ;;  %v2218_v27 = vpop.f32.mrf.mxu1 }
  0xca   : > { %v4871_v28 = vpack.c.bf16 %v2058_v26, %v2056_v20  ;;  %v5031_v29 = vpack.c.bf16 %v2218_v27, %v2216_v21 }
  0xcc   : > { %5495 = vst [vmem:[%s5800_s24 + $0x18] sm:$0xff] %v4871_v28  }
  0xcd   : > { %5527 = vst [vmem:[%s5800_s24 + $0x118] sm:$0xff] %v5031_v29  }
  0xd0   : > { %v2378_v30 = vpop.f32.mrf.mxu2  ;;  %v2538_v31 = vpop.f32.mrf.mxu3 }
  0xd1   : > { %v5191_v34 = vpack.c.bf16 %v2378_v30, %v2376_v24  ;;  %v5351_v35 = vpack.c.bf16 %v2538_v31, %v2536_v25  ;;  %v2061_v36 = vpop.f32.mrf.mxu0  ;;  %v2221_v37 = vpop.f32.mrf.mxu1 }
  0xd3   : > { %5559 = vst [vmem:[%s5800_s24 + $0x218] sm:$0xff] %v5191_v34  }
  0xd4   : > { %5591 = vst [vmem:[%s5800_s24 + $0x318] sm:$0xff] %v5351_v35   ;;  %4605 = vmatmul.msk.bf16.gmra.mxu0 %vm1647_vm0, %v4735_v32  ;;  %4637 = vmatmul.msk.bf16.gmra.mxu1 %vm1647_vm0, %v4767_v33  ;;  %v4739_v32 = vld [vmem:[%s5721_s21 + $0x80] sm:$0xff] }
  0xd5   : > { %4669 = vmatmul.msk.bf16.gmra.mxu2 %vm1647_vm0, %v4799_v38  ;;  %4701 = vmatmul.msk.bf16.gmra.mxu3 %vm1647_vm0, %v4831_v39  ;;  %v4771_v33 = vld [vmem:[%s5721_s21 + $0x180] sm:$0xff] }
  0xd6   : > { %v4803_v38 = vld [vmem:[%s5721_s21 + $0x280] sm:$0xff] }
  0xd7   : > { %v4835_v39 = vld [vmem:[%s5721_s21 + $0x380] sm:$0xff] }
  0xd8   : > { %v2381_v40 = vpop.f32.mrf.mxu2  ;;  %v2541_v41 = vpop.f32.mrf.mxu3 }
  0xd9   : > { %v2063_v42 = vpop.f32.mrf.mxu0  ;;  %v2223_v43 = vpop.f32.mrf.mxu1 }
  0xda   : > { %v4876_v44 = vpack.c.bf16 %v2063_v42, %v2061_v36  ;;  %v5036_v45 = vpack.c.bf16 %v2223_v43, %v2221_v37 }
  0xdc   : > { %5496 = vst [vmem:[%s5800_s24 + $0x20] sm:$0xff] %v4876_v44  }
  0xdd   : > { %5528 = vst [vmem:[%s5800_s24 + $0x120] sm:$0xff] %v5036_v45  }
  0xe0   : > { %v2383_v46 = vpop.f32.mrf.mxu2  ;;  %v2543_v47 = vpop.f32.mrf.mxu3 }
  0xe1   : > { %v5196_v50 = vpack.c.bf16 %v2383_v46, %v2381_v40  ;;  %v5356_v51 = vpack.c.bf16 %v2543_v47, %v2541_v41  ;;  %v2066_v52 = vpop.f32.mrf.mxu0  ;;  %v2226_v53 = vpop.f32.mrf.mxu1 }
  0xe3   : > { %5560 = vst [vmem:[%s5800_s24 + $0x220] sm:$0xff] %v5196_v50  }
  0xe4   : > { %5592 = vst [vmem:[%s5800_s24 + $0x320] sm:$0xff] %v5356_v51   ;;  %4606 = vmatmul.msk.bf16.gmra.mxu0 %vm1647_vm0, %v4736_v48  ;;  %4638 = vmatmul.msk.bf16.gmra.mxu1 %vm1647_vm0, %v4768_v49  ;;  %v4740_v48 = vld [vmem:[%s5721_s21 + $0x88] sm:$0xff] }
  0xe5   : > { %4670 = vmatmul.msk.bf16.gmra.mxu2 %vm1647_vm0, %v4800_v54  ;;  %4702 = vmatmul.msk.bf16.gmra.mxu3 %vm1647_vm0, %v4832_v55  ;;  %v4772_v49 = vld [vmem:[%s5721_s21 + $0x188] sm:$0xff] }
  0xe6   : > { %v4804_v54 = vld [vmem:[%s5721_s21 + $0x288] sm:$0xff] }
  0xe7   : > { %v4836_v55 = vld [vmem:[%s5721_s21 + $0x388] sm:$0xff] }
  0xe8   : > { %v2386_v56 = vpop.f32.mrf.mxu2  ;;  %v2546_v57 = vpop.f32.mrf.mxu3 }
  0xe9   : > { %v2068_v58 = vpop.f32.mrf.mxu0  ;;  %v2228_v59 = vpop.f32.mrf.mxu1 }
  0xea   : > { %v4881_v60 = vpack.c.bf16 %v2068_v58, %v2066_v52  ;;  %v5041_v61 = vpack.c.bf16 %v2228_v59, %v2226_v53 }
  0xec   : > { %5497 = vst [vmem:[%s5800_s24 + $0x28] sm:$0xff] %v4881_v60  }
  0xed   : > { %5529 = vst [vmem:[%s5800_s24 + $0x128] sm:$0xff] %v5041_v61  }
  0xf0   : > { %v2388_v62 = vpop.f32.mrf.mxu2  ;;  %v2548_v63 = vpop.f32.mrf.mxu3 }
  0xf1   : > { %v5201_v2 = vpack.c.bf16 %v2388_v62, %v2386_v56  ;;  %v5361_v3 = vpack.c.bf16 %v2548_v63, %v2546_v57  ;;  %v2071_v4 = vpop.f32.mrf.mxu0  ;;  %v2231_v5 = vpop.f32.mrf.mxu1 }
  0xf3   : > { %5561 = vst [vmem:[%s5800_s24 + $0x228] sm:$0xff] %v5201_v2  }
  0xf4   : > { %5593 = vst [vmem:[%s5800_s24 + $0x328] sm:$0xff] %v5361_v3   ;;  %4607 = vmatmul.msk.bf16.gmra.mxu0 %vm1647_vm0, %v4737_v0  ;;  %4639 = vmatmul.msk.bf16.gmra.mxu1 %vm1647_vm0, %v4769_v1  ;;  %v4741_v0 = vld [vmem:[%s5721_s21 + $0x90] sm:$0xff] }
  0xf5   : > { %4671 = vmatmul.msk.bf16.gmra.mxu2 %vm1647_vm0, %v4801_v6  ;;  %4703 = vmatmul.msk.bf16.gmra.mxu3 %vm1647_vm0, %v4833_v7  ;;  %v4773_v1 = vld [vmem:[%s5721_s21 + $0x190] sm:$0xff] }
  0xf6   : > { %v4805_v6 = vld [vmem:[%s5721_s21 + $0x290] sm:$0xff] }
  0xf7   : > { %v4837_v7 = vld [vmem:[%s5721_s21 + $0x390] sm:$0xff] }
  0xf8   : > { %v2391_v8 = vpop.f32.mrf.mxu2  ;;  %v2551_v9 = vpop.f32.mrf.mxu3 }
  0xf9   : > { %v2073_v10 = vpop.f32.mrf.mxu0  ;;  %v2233_v11 = vpop.f32.mrf.mxu1 }
  0xfa   : > { %v4886_v12 = vpack.c.bf16 %v2073_v10, %v2071_v4  ;;  %v5046_v13 = vpack.c.bf16 %v2233_v11, %v2231_v5 }
  0xfc   : > { %5498 = vst [vmem:[%s5800_s24 + $0x30] sm:$0xff] %v4886_v12  }
  0xfd   : > { %5530 = vst [vmem:[%s5800_s24 + $0x130] sm:$0xff] %v5046_v13  }
 0x100   : > { %v2393_v14 = vpop.f32.mrf.mxu2  ;;  %v2553_v15 = vpop.f32.mrf.mxu3 }
 0x101   : > { %v5206_v18 = vpack.c.bf16 %v2393_v14, %v2391_v8  ;;  %v5366_v19 = vpack.c.bf16 %v2553_v15, %v2551_v9  ;;  %v2076_v20 = vpop.f32.mrf.mxu0  ;;  %v2236_v21 = vpop.f32.mrf.mxu1 }
 0x103   : > { %5562 = vst [vmem:[%s5800_s24 + $0x230] sm:$0xff] %v5206_v18  }
 0x104   : > { %5594 = vst [vmem:[%s5800_s24 + $0x330] sm:$0xff] %v5366_v19   ;;  %4608 = vmatmul.msk.bf16.gmra.mxu0 %vm1647_vm0, %v4738_v16  ;;  %4640 = vmatmul.msk.bf16.gmra.mxu1 %vm1647_vm0, %v4770_v17  ;;  %v4742_v16 = vld [vmem:[%s5721_s21 + $0x98] sm:$0xff] }
 0x105   : > { %4672 = vmatmul.msk.bf16.gmra.mxu2 %vm1647_vm0, %v4802_v22  ;;  %4704 = vmatmul.msk.bf16.gmra.mxu3 %vm1647_vm0, %v4834_v23  ;;  %v4774_v17 = vld [vmem:[%s5721_s21 + $0x198] sm:$0xff] }
 0x106   : > { %v4806_v22 = vld [vmem:[%s5721_s21 + $0x298] sm:$0xff] }
 0x107   : > { %v4838_v23 = vld [vmem:[%s5721_s21 + $0x398] sm:$0xff] }
 0x108   : > { %v2396_v24 = vpop.f32.mrf.mxu2  ;;  %v2556_v25 = vpop.f32.mrf.mxu3 }
 0x109   : > { %v2078_v26 = vpop.f32.mrf.mxu0  ;;  %v2238_v27 = vpop.f32.mrf.mxu1 }
 0x10a   : > { %v4891_v28 = vpack.c.bf16 %v2078_v26, %v2076_v20  ;;  %v5051_v29 = vpack.c.bf16 %v2238_v27, %v2236_v21 }
 0x10c   : > { %5499 = vst [vmem:[%s5800_s24 + $0x38] sm:$0xff] %v4891_v28  }
 0x10d   : > { %5531 = vst [vmem:[%s5800_s24 + $0x138] sm:$0xff] %v5051_v29  }
 0x110   : > { %v2398_v30 = vpop.f32.mrf.mxu2  ;;  %v2558_v31 = vpop.f32.mrf.mxu3 }
 0x111   : > { %v5211_v34 = vpack.c.bf16 %v2398_v30, %v2396_v24  ;;  %v5371_v35 = vpack.c.bf16 %v2558_v31, %v2556_v25  ;;  %v2081_v36 = vpop.f32.mrf.mxu0  ;;  %v2241_v37 = vpop.f32.mrf.mxu1 }
 0x113   : > { %5563 = vst [vmem:[%s5800_s24 + $0x238] sm:$0xff] %v5211_v34  }
 0x114   : > { %5595 = vst [vmem:[%s5800_s24 + $0x338] sm:$0xff] %v5371_v35   ;;  %4609 = vmatmul.msk.bf16.gmra.mxu0 %vm1647_vm0, %v4739_v32  ;;  %4641 = vmatmul.msk.bf16.gmra.mxu1 %vm1647_vm0, %v4771_v33  ;;  %v4743_v32 = vld [vmem:[%s5721_s21 + $0xa0] sm:$0xff] }
 0x115   : > { %4673 = vmatmul.msk.bf16.gmra.mxu2 %vm1647_vm0, %v4803_v38  ;;  %4705 = vmatmul.msk.bf16.gmra.mxu3 %vm1647_vm0, %v4835_v39  ;;  %v4775_v33 = vld [vmem:[%s5721_s21 + $0x1a0] sm:$0xff] }
 0x116   : > { %v4807_v38 = vld [vmem:[%s5721_s21 + $0x2a0] sm:$0xff] }
 0x117   : > { %v4839_v39 = vld [vmem:[%s5721_s21 + $0x3a0] sm:$0xff] }
 0x118   : > { %v2401_v40 = vpop.f32.mrf.mxu2  ;;  %v2561_v41 = vpop.f32.mrf.mxu3 }
 0x119   : > { %v2083_v42 = vpop.f32.mrf.mxu0  ;;  %v2243_v43 = vpop.f32.mrf.mxu1 }
 0x11a   : > { %v4896_v44 = vpack.c.bf16 %v2083_v42, %v2081_v36  ;;  %v5056_v45 = vpack.c.bf16 %v2243_v43, %v2241_v37 }
 0x11c   : > { %5500 = vst [vmem:[%s5800_s24 + $0x40] sm:$0xff] %v4896_v44  }
 0x11d   : > { %5532 = vst [vmem:[%s5800_s24 + $0x140] sm:$0xff] %v5056_v45  }
 0x120   : > { %v2403_v46 = vpop.f32.mrf.mxu2  ;;  %v2563_v47 = vpop.f32.mrf.mxu3 }
 0x121   : > { %v5216_v50 = vpack.c.bf16 %v2403_v46, %v2401_v40  ;;  %v5376_v51 = vpack.c.bf16 %v2563_v47, %v2561_v41  ;;  %v2086_v52 = vpop.f32.mrf.mxu0  ;;  %v2246_v53 = vpop.f32.mrf.mxu1 }
 0x123   : > { %5564 = vst [vmem:[%s5800_s24 + $0x240] sm:$0xff] %v5216_v50  }
 0x124   : > { %5596 = vst [vmem:[%s5800_s24 + $0x340] sm:$0xff] %v5376_v51   ;;  %4610 = vmatmul.msk.bf16.gmra.mxu0 %vm1647_vm0, %v4740_v48  ;;  %4642 = vmatmul.msk.bf16.gmra.mxu1 %vm1647_vm0, %v4772_v49  ;;  %v4744_v48 = vld [vmem:[%s5721_s21 + $0xa8] sm:$0xff] }
 0x125   : > { %4674 = vmatmul.msk.bf16.gmra.mxu2 %vm1647_vm0, %v4804_v54  ;;  %4706 = vmatmul.msk.bf16.gmra.mxu3 %vm1647_vm0, %v4836_v55  ;;  %v4776_v49 = vld [vmem:[%s5721_s21 + $0x1a8] sm:$0xff] }
 0x126   : > { %v4808_v54 = vld [vmem:[%s5721_s21 + $0x2a8] sm:$0xff] }
 0x127   : > { %v4840_v55 = vld [vmem:[%s5721_s21 + $0x3a8] sm:$0xff] }
 0x128   : > { %v2406_v56 = vpop.f32.mrf.mxu2  ;;  %v2566_v57 = vpop.f32.mrf.mxu3 }
 0x129   : > { %v2088_v58 = vpop.f32.mrf.mxu0  ;;  %v2248_v59 = vpop.f32.mrf.mxu1 }
 0x12a   : > { %v4901_v60 = vpack.c.bf16 %v2088_v58, %v2086_v52  ;;  %v5061_v61 = vpack.c.bf16 %v2248_v59, %v2246_v53 }
 0x12c   : > { %5501 = vst [vmem:[%s5800_s24 + $0x48] sm:$0xff] %v4901_v60  }
 0x12d   : > { %5533 = vst [vmem:[%s5800_s24 + $0x148] sm:$0xff] %v5061_v61  }
 0x130   : > { %v2408_v62 = vpop.f32.mrf.mxu2  ;;  %v2568_v63 = vpop.f32.mrf.mxu3 }
 0x131   : > { %v5221_v2 = vpack.c.bf16 %v2408_v62, %v2406_v56  ;;  %v5381_v3 = vpack.c.bf16 %v2568_v63, %v2566_v57  ;;  %v2091_v4 = vpop.f32.mrf.mxu0  ;;  %v2251_v5 = vpop.f32.mrf.mxu1 }
 0x133   : > { %5565 = vst [vmem:[%s5800_s24 + $0x248] sm:$0xff] %v5221_v2  }
 0x134   : > { %5597 = vst [vmem:[%s5800_s24 + $0x348] sm:$0xff] %v5381_v3   ;;  %4611 = vmatmul.msk.bf16.gmra.mxu0 %vm1647_vm0, %v4741_v0  ;;  %4643 = vmatmul.msk.bf16.gmra.mxu1 %vm1647_vm0, %v4773_v1  ;;  %v4745_v0 = vld [vmem:[%s5721_s21 + $0xb0] sm:$0xff] }
 0x135   : > { %4675 = vmatmul.msk.bf16.gmra.mxu2 %vm1647_vm0, %v4805_v6  ;;  %4707 = vmatmul.msk.bf16.gmra.mxu3 %vm1647_vm0, %v4837_v7  ;;  %v4777_v1 = vld [vmem:[%s5721_s21 + $0x1b0] sm:$0xff] }
 0x136   : > { %v4809_v6 = vld [vmem:[%s5721_s21 + $0x2b0] sm:$0xff] }
 0x137   : > { %v4841_v7 = vld [vmem:[%s5721_s21 + $0x3b0] sm:$0xff] }
 0x138   : > { %v2411_v8 = vpop.f32.mrf.mxu2  ;;  %v2571_v9 = vpop.f32.mrf.mxu3 }
 0x139   : > { %v2093_v10 = vpop.f32.mrf.mxu0  ;;  %v2253_v11 = vpop.f32.mrf.mxu1 }
 0x13a   : > { %v4906_v12 = vpack.c.bf16 %v2093_v10, %v2091_v4  ;;  %v5066_v13 = vpack.c.bf16 %v2253_v11, %v2251_v5 }
 0x13c   : > { %5502 = vst [vmem:[%s5800_s24 + $0x50] sm:$0xff] %v4906_v12  }
 0x13d   : > { %5534 = vst [vmem:[%s5800_s24 + $0x150] sm:$0xff] %v5066_v13  }
 0x140   : > { %v2413_v14 = vpop.f32.mrf.mxu2  ;;  %v2573_v15 = vpop.f32.mrf.mxu3 }
 0x141   : > { %v5226_v18 = vpack.c.bf16 %v2413_v14, %v2411_v8  ;;  %v5386_v19 = vpack.c.bf16 %v2573_v15, %v2571_v9  ;;  %v2096_v20 = vpop.f32.mrf.mxu0  ;;  %v2256_v21 = vpop.f32.mrf.mxu1 }
 0x143   : > { %5566 = vst [vmem:[%s5800_s24 + $0x250] sm:$0xff] %v5226_v18  }
 0x144   : > { %5598 = vst [vmem:[%s5800_s24 + $0x350] sm:$0xff] %v5386_v19   ;;  %4612 = vmatmul.msk.bf16.gmra.mxu0 %vm1647_vm0, %v4742_v16  ;;  %4644 = vmatmul.msk.bf16.gmra.mxu1 %vm1647_vm0, %v4774_v17  ;;  %v4746_v16 = vld [vmem:[%s5721_s21 + $0xb8] sm:$0xff] }
 0x145   : > { %4676 = vmatmul.msk.bf16.gmra.mxu2 %vm1647_vm0, %v4806_v22  ;;  %4708 = vmatmul.msk.bf16.gmra.mxu3 %vm1647_vm0, %v4838_v23  ;;  %v4778_v17 = vld [vmem:[%s5721_s21 + $0x1b8] sm:$0xff] }
 0x146   : > { %v4810_v22 = vld [vmem:[%s5721_s21 + $0x2b8] sm:$0xff] }
 0x147   : > { %v4842_v23 = vld [vmem:[%s5721_s21 + $0x3b8] sm:$0xff] }
 0x148   : > { %v2416_v24 = vpop.f32.mrf.mxu2  ;;  %v2576_v25 = vpop.f32.mrf.mxu3 }
 0x149   : > { %v2098_v26 = vpop.f32.mrf.mxu0  ;;  %v2258_v27 = vpop.f32.mrf.mxu1 }
 0x14a   : > { %v4911_v28 = vpack.c.bf16 %v2098_v26, %v2096_v20  ;;  %v5071_v29 = vpack.c.bf16 %v2258_v27, %v2256_v21 }
 0x14c   : > { %5503 = vst [vmem:[%s5800_s24 + $0x58] sm:$0xff] %v4911_v28  }
 0x14d   : > { %5535 = vst [vmem:[%s5800_s24 + $0x158] sm:$0xff] %v5071_v29  }
 0x150   : > { %v2418_v30 = vpop.f32.mrf.mxu2  ;;  %v2578_v31 = vpop.f32.mrf.mxu3 }
 0x151   : > { %v5231_v34 = vpack.c.bf16 %v2418_v30, %v2416_v24  ;;  %v5391_v35 = vpack.c.bf16 %v2578_v31, %v2576_v25  ;;  %v2101_v36 = vpop.f32.mrf.mxu0  ;;  %v2261_v37 = vpop.f32.mrf.mxu1 }
 0x153   : > { %5567 = vst [vmem:[%s5800_s24 + $0x258] sm:$0xff] %v5231_v34  }
 0x154   : > { %5599 = vst [vmem:[%s5800_s24 + $0x358] sm:$0xff] %v5391_v35   ;;  %4613 = vmatmul.msk.bf16.gmra.mxu0 %vm1647_vm0, %v4743_v32  ;;  %4645 = vmatmul.msk.bf16.gmra.mxu1 %vm1647_vm0, %v4775_v33  ;;  %v4747_v32 = vld [vmem:[%s5721_s21 + $0xc0] sm:$0xff] }
 0x155   : > { %4677 = vmatmul.msk.bf16.gmra.mxu2 %vm1647_vm0, %v4807_v38  ;;  %4709 = vmatmul.msk.bf16.gmra.mxu3 %vm1647_vm0, %v4839_v39  ;;  %v4779_v33 = vld [vmem:[%s5721_s21 + $0x1c0] sm:$0xff] }
 0x156   : > { %v4811_v38 = vld [vmem:[%s5721_s21 + $0x2c0] sm:$0xff] }
 0x157   : > { %v4843_v39 = vld [vmem:[%s5721_s21 + $0x3c0] sm:$0xff] }
 0x158   : > { %v2421_v40 = vpop.f32.mrf.mxu2  ;;  %v2581_v41 = vpop.f32.mrf.mxu3 }
 0x159   : > { %v2103_v42 = vpop.f32.mrf.mxu0  ;;  %v2263_v43 = vpop.f32.mrf.mxu1 }
 0x15a   : > { %v4916_v44 = vpack.c.bf16 %v2103_v42, %v2101_v36  ;;  %v5076_v45 = vpack.c.bf16 %v2263_v43, %v2261_v37 }
 0x15c   : > { %5504 = vst [vmem:[%s5800_s24 + $0x60] sm:$0xff] %v4916_v44  }
 0x15d   : > { %5536 = vst [vmem:[%s5800_s24 + $0x160] sm:$0xff] %v5076_v45  }
 0x160   : > { %v2423_v46 = vpop.f32.mrf.mxu2  ;;  %v2583_v47 = vpop.f32.mrf.mxu3 }
 0x161   : > { %v5236_v50 = vpack.c.bf16 %v2423_v46, %v2421_v40  ;;  %v5396_v51 = vpack.c.bf16 %v2583_v47, %v2581_v41  ;;  %v2106_v52 = vpop.f32.mrf.mxu0  ;;  %v2266_v53 = vpop.f32.mrf.mxu1 }
 0x163   : > { %5568 = vst [vmem:[%s5800_s24 + $0x260] sm:$0xff] %v5236_v50  }
 0x164   : > { %5600 = vst [vmem:[%s5800_s24 + $0x360] sm:$0xff] %v5396_v51   ;;  %4614 = vmatmul.msk.bf16.gmra.mxu0 %vm1647_vm0, %v4744_v48  ;;  %4646 = vmatmul.msk.bf16.gmra.mxu1 %vm1647_vm0, %v4776_v49  ;;  %v4748_v48 = vld [vmem:[%s5721_s21 + $0xc8] sm:$0xff] }
 0x165   : > { %4678 = vmatmul.msk.bf16.gmra.mxu2 %vm1647_vm0, %v4808_v54  ;;  %4710 = vmatmul.msk.bf16.gmra.mxu3 %vm1647_vm0, %v4840_v55  ;;  %v4780_v49 = vld [vmem:[%s5721_s21 + $0x1c8] sm:$0xff] }
 0x166   : > { %v4812_v54 = vld [vmem:[%s5721_s21 + $0x2c8] sm:$0xff] }
 0x167   : > { %v4844_v55 = vld [vmem:[%s5721_s21 + $0x3c8] sm:$0xff] }
 0x168   : > { %v2426_v56 = vpop.f32.mrf.mxu2  ;;  %v2586_v57 = vpop.f32.mrf.mxu3 }
 0x169   : > { %v2108_v58 = vpop.f32.mrf.mxu0  ;;  %v2268_v59 = vpop.f32.mrf.mxu1 }
 0x16a   : > { %v4921_v60 = vpack.c.bf16 %v2108_v58, %v2106_v52  ;;  %v5081_v61 = vpack.c.bf16 %v2268_v59, %v2266_v53 }
 0x16c   : > { %5505 = vst [vmem:[%s5800_s24 + $0x68] sm:$0xff] %v4921_v60  }
 0x16d   : > { %5537 = vst [vmem:[%s5800_s24 + $0x168] sm:$0xff] %v5081_v61  }
 0x170   : > { %v2428_v62 = vpop.f32.mrf.mxu2  ;;  %v2588_v63 = vpop.f32.mrf.mxu3 }
 0x171   : > { %v5241_v2 = vpack.c.bf16 %v2428_v62, %v2426_v56  ;;  %v5401_v3 = vpack.c.bf16 %v2588_v63, %v2586_v57  ;;  %v2111_v4 = vpop.f32.mrf.mxu0  ;;  %v2271_v5 = vpop.f32.mrf.mxu1 }
 0x173   : > { %5569 = vst [vmem:[%s5800_s24 + $0x268] sm:$0xff] %v5241_v2  }
 0x174   : > { %5601 = vst [vmem:[%s5800_s24 + $0x368] sm:$0xff] %v5401_v3   ;;  %4615 = vmatmul.msk.bf16.gmra.mxu0 %vm1647_vm0, %v4745_v0  ;;  %4647 = vmatmul.msk.bf16.gmra.mxu1 %vm1647_vm0, %v4777_v1  ;;  %v4749_v0 = vld [vmem:[%s5721_s21 + $0xd0] sm:$0xff] }
 0x175   : > { %4679 = vmatmul.msk.bf16.gmra.mxu2 %vm1647_vm0, %v4809_v6  ;;  %4711 = vmatmul.msk.bf16.gmra.mxu3 %vm1647_vm0, %v4841_v7  ;;  %v4781_v1 = vld [vmem:[%s5721_s21 + $0x1d0] sm:$0xff] }
 0x176   : > { %v4813_v6 = vld [vmem:[%s5721_s21 + $0x2d0] sm:$0xff] }
 0x177   : > { %v4845_v7 = vld [vmem:[%s5721_s21 + $0x3d0] sm:$0xff] }
 0x178   : > { %v2431_v8 = vpop.f32.mrf.mxu2  ;;  %v2591_v9 = vpop.f32.mrf.mxu3 }
 0x179   : > { %v2113_v10 = vpop.f32.mrf.mxu0  ;;  %v2273_v11 = vpop.f32.mrf.mxu1 }
 0x17a   : > { %v4926_v12 = vpack.c.bf16 %v2113_v10, %v2111_v4  ;;  %v5086_v13 = vpack.c.bf16 %v2273_v11, %v2271_v5 }
 0x17c   : > { %5506 = vst [vmem:[%s5800_s24 + $0x70] sm:$0xff] %v4926_v12  }
 0x17d   : > { %5538 = vst [vmem:[%s5800_s24 + $0x170] sm:$0xff] %v5086_v13  }
 0x180   : > { %v2433_v14 = vpop.f32.mrf.mxu2  ;;  %v2593_v15 = vpop.f32.mrf.mxu3 }
 0x181   : > { %v5246_v18 = vpack.c.bf16 %v2433_v14, %v2431_v8  ;;  %v5406_v19 = vpack.c.bf16 %v2593_v15, %v2591_v9  ;;  %v2116_v20 = vpop.f32.mrf.mxu0  ;;  %v2276_v21 = vpop.f32.mrf.mxu1 }
 0x183   : > { %5570 = vst [vmem:[%s5800_s24 + $0x270] sm:$0xff] %v5246_v18  }
 0x184   : > { %5602 = vst [vmem:[%s5800_s24 + $0x370] sm:$0xff] %v5406_v19   ;;  %4616 = vmatmul.msk.bf16.gmra.mxu0 %vm1647_vm0, %v4746_v16  ;;  %4648 = vmatmul.msk.bf16.gmra.mxu1 %vm1647_vm0, %v4778_v17  ;;  %v4750_v16 = vld [vmem:[%s5721_s21 + $0xd8] sm:$0xff] }
 0x185   : > { %4680 = vmatmul.msk.bf16.gmra.mxu2 %vm1647_vm0, %v4810_v22  ;;  %4712 = vmatmul.msk.bf16.gmra.mxu3 %vm1647_vm0, %v4842_v23  ;;  %v4782_v17 = vld [vmem:[%s5721_s21 + $0x1d8] sm:$0xff] }
 0x186   : > { %v4814_v22 = vld [vmem:[%s5721_s21 + $0x2d8] sm:$0xff] }
 0x187   : > { %v4846_v23 = vld [vmem:[%s5721_s21 + $0x3d8] sm:$0xff] }
 0x188   : > { %v2436_v24 = vpop.f32.mrf.mxu2  ;;  %v2596_v25 = vpop.f32.mrf.mxu3 }
 0x189   : > { %v2118_v26 = vpop.f32.mrf.mxu0  ;;  %v2278_v27 = vpop.f32.mrf.mxu1 }
 0x18a   : > { %v4931_v28 = vpack.c.bf16 %v2118_v26, %v2116_v20  ;;  %v5091_v29 = vpack.c.bf16 %v2278_v27, %v2276_v21 }
 0x18c   : > { %5507 = vst [vmem:[%s5800_s24 + $0x78] sm:$0xff] %v4931_v28  }
 0x18d   : > { %5539 = vst [vmem:[%s5800_s24 + $0x178] sm:$0xff] %v5091_v29  }
 0x190   : > { %v2438_v30 = vpop.f32.mrf.mxu2  ;;  %v2598_v31 = vpop.f32.mrf.mxu3 }
 0x191   : > { %v5251_v34 = vpack.c.bf16 %v2438_v30, %v2436_v24  ;;  %v5411_v35 = vpack.c.bf16 %v2598_v31, %v2596_v25  ;;  %v2121_v36 = vpop.f32.mrf.mxu0  ;;  %v2281_v37 = vpop.f32.mrf.mxu1 }
 0x193   : > { %5571 = vst [vmem:[%s5800_s24 + $0x278] sm:$0xff] %v5251_v34  }
 0x194   : > { %5603 = vst [vmem:[%s5800_s24 + $0x378] sm:$0xff] %v5411_v35   ;;  %4617 = vmatmul.msk.bf16.gmra.mxu0 %vm1647_vm0, %v4747_v32  ;;  %4649 = vmatmul.msk.bf16.gmra.mxu1 %vm1647_vm0, %v4779_v33  ;;  %v4751_v32 = vld [vmem:[%s5721_s21 + $0xe0] sm:$0xff] }
 0x195   : > { %4681 = vmatmul.msk.bf16.gmra.mxu2 %vm1647_vm0, %v4811_v38  ;;  %4713 = vmatmul.msk.bf16.gmra.mxu3 %vm1647_vm0, %v4843_v39  ;;  %v4783_v33 = vld [vmem:[%s5721_s21 + $0x1e0] sm:$0xff] }
 0x196   : > { %v4815_v38 = vld [vmem:[%s5721_s21 + $0x2e0] sm:$0xff] }
 0x197   : > { %v4847_v39 = vld [vmem:[%s5721_s21 + $0x3e0] sm:$0xff] }
 0x198   : > { %v2441_v40 = vpop.f32.mrf.mxu2  ;;  %v2601_v41 = vpop.f32.mrf.mxu3 }
 0x199   : > { %v2123_v42 = vpop.f32.mrf.mxu0  ;;  %v2283_v43 = vpop.f32.mrf.mxu1 }
 0x19a   : > { %v4936_v44 = vpack.c.bf16 %v2123_v42, %v2121_v36  ;;  %v5096_v45 = vpack.c.bf16 %v2283_v43, %v2281_v37 }
 0x19c   : > { %5508 = vst [vmem:[%s5800_s24 + $0x80] sm:$0xff] %v4936_v44  }
 0x19d   : > { %5540 = vst [vmem:[%s5800_s24 + $0x180] sm:$0xff] %v5096_v45  }
 0x1a0   : > { %v2443_v46 = vpop.f32.mrf.mxu2  ;;  %v2603_v47 = vpop.f32.mrf.mxu3 }
 0x1a1   : > { %v5256_v50 = vpack.c.bf16 %v2443_v46, %v2441_v40  ;;  %v5416_v51 = vpack.c.bf16 %v2603_v47, %v2601_v41  ;;  %v2126_v52 = vpop.f32.mrf.mxu0  ;;  %v2286_v53 = vpop.f32.mrf.mxu1 }
 0x1a3   : > { %5572 = vst [vmem:[%s5800_s24 + $0x280] sm:$0xff] %v5256_v50  }
 0x1a4   : > { %5604 = vst [vmem:[%s5800_s24 + $0x380] sm:$0xff] %v5416_v51   ;;  %4618 = vmatmul.msk.bf16.gmra.mxu0 %vm1647_vm0, %v4748_v48  ;;  %4650 = vmatmul.msk.bf16.gmra.mxu1 %vm1647_vm0, %v4780_v49  ;;  %v4752_v48 = vld [vmem:[%s5721_s21 + $0xe8] sm:$0xff] }
 0x1a5   : > { %4682 = vmatmul.msk.bf16.gmra.mxu2 %vm1647_vm0, %v4812_v54  ;;  %4714 = vmatmul.msk.bf16.gmra.mxu3 %vm1647_vm0, %v4844_v55  ;;  %v4784_v49 = vld [vmem:[%s5721_s21 + $0x1e8] sm:$0xff] }
 0x1a6   : > { %v4816_v54 = vld [vmem:[%s5721_s21 + $0x2e8] sm:$0xff] }
 0x1a7   : > { %v4848_v55 = vld [vmem:[%s5721_s21 + $0x3e8] sm:$0xff] }
 0x1a8   : > { %v2446_v56 = vpop.f32.mrf.mxu2  ;;  %v2606_v57 = vpop.f32.mrf.mxu3 }
 0x1a9   : > { %v2128_v58 = vpop.f32.mrf.mxu0  ;;  %v2288_v59 = vpop.f32.mrf.mxu1 }
 0x1aa   : > { %v4941_v60 = vpack.c.bf16 %v2128_v58, %v2126_v52  ;;  %v5101_v61 = vpack.c.bf16 %v2288_v59, %v2286_v53 }
 0x1ac   : > { %5509 = vst [vmem:[%s5800_s24 + $0x88] sm:$0xff] %v4941_v60  }
 0x1ad   : > { %5541 = vst [vmem:[%s5800_s24 + $0x188] sm:$0xff] %v5101_v61  }
 0x1b0   : > { %v2448_v62 = vpop.f32.mrf.mxu2  ;;  %v2608_v63 = vpop.f32.mrf.mxu3 }
 0x1b1   : > { %v5261_v2 = vpack.c.bf16 %v2448_v62, %v2446_v56  ;;  %v5421_v3 = vpack.c.bf16 %v2608_v63, %v2606_v57  ;;  %v2131_v4 = vpop.f32.mrf.mxu0  ;;  %v2291_v5 = vpop.f32.mrf.mxu1 }
 0x1b3   : > { %5573 = vst [vmem:[%s5800_s24 + $0x288] sm:$0xff] %v5261_v2  }
 0x1b4   : > { %5605 = vst [vmem:[%s5800_s24 + $0x388] sm:$0xff] %v5421_v3   ;;  %4619 = vmatmul.msk.bf16.gmra.mxu0 %vm1647_vm0, %v4749_v0  ;;  %4651 = vmatmul.msk.bf16.gmra.mxu1 %vm1647_vm0, %v4781_v1  ;;  %v4753_v0 = vld [vmem:[%s5721_s21 + $0xf0] sm:$0xff] }
 0x1b5   : > { %4683 = vmatmul.msk.bf16.gmra.mxu2 %vm1647_vm0, %v4813_v6  ;;  %4715 = vmatmul.msk.bf16.gmra.mxu3 %vm1647_vm0, %v4845_v7  ;;  %v4785_v1 = vld [vmem:[%s5721_s21 + $0x1f0] sm:$0xff] }
 0x1b6   : > { %v4817_v6 = vld [vmem:[%s5721_s21 + $0x2f0] sm:$0xff] }
 0x1b7   : > { %v4849_v7 = vld [vmem:[%s5721_s21 + $0x3f0] sm:$0xff] }
 0x1b8   : > { %v2451_v8 = vpop.f32.mrf.mxu2  ;;  %v2611_v9 = vpop.f32.mrf.mxu3 }
 0x1b9   : > { %v2133_v10 = vpop.f32.mrf.mxu0  ;;  %v2293_v11 = vpop.f32.mrf.mxu1 }
 0x1ba   : > { %v4946_v12 = vpack.c.bf16 %v2133_v10, %v2131_v4  ;;  %v5106_v13 = vpack.c.bf16 %v2293_v11, %v2291_v5 }
 0x1bc   : > { %5510 = vst [vmem:[%s5800_s24 + $0x90] sm:$0xff] %v4946_v12  }
 0x1bd   : > { %5542 = vst [vmem:[%s5800_s24 + $0x190] sm:$0xff] %v5106_v13  }
 0x1c0   : > { %v2453_v14 = vpop.f32.mrf.mxu2  ;;  %v2613_v15 = vpop.f32.mrf.mxu3 }
 0x1c1   : > { %v5266_v18 = vpack.c.bf16 %v2453_v14, %v2451_v8  ;;  %v5426_v19 = vpack.c.bf16 %v2613_v15, %v2611_v9  ;;  %v2136_v20 = vpop.f32.mrf.mxu0  ;;  %v2296_v21 = vpop.f32.mrf.mxu1 }
 0x1c3   : > { %5574 = vst [vmem:[%s5800_s24 + $0x290] sm:$0xff] %v5266_v18  }
 0x1c4   : > { %5606 = vst [vmem:[%s5800_s24 + $0x390] sm:$0xff] %v5426_v19   ;;  %4620 = vmatmul.msk.bf16.gmra.mxu0 %vm1647_vm0, %v4750_v16  ;;  %4652 = vmatmul.msk.bf16.gmra.mxu1 %vm1647_vm0, %v4782_v17  ;;  %v4754_v16 = vld [vmem:[%s5721_s21 + $0xf8] sm:$0xff] }
 0x1c5   : > { %4684 = vmatmul.msk.bf16.gmra.mxu2 %vm1647_vm0, %v4814_v22  ;;  %4716 = vmatmul.msk.bf16.gmra.mxu3 %vm1647_vm0, %v4846_v23  ;;  %v4786_v17 = vld [vmem:[%s5721_s21 + $0x1f8] sm:$0xff] }
 0x1c6   : > { %v4818_v22 = vld [vmem:[%s5721_s21 + $0x2f8] sm:$0xff] }
 0x1c7   : > { %v4850_v23 = vld [vmem:[%s5721_s21 + $0x3f8] sm:$0xff] }
 0x1c8   : > { %v2456_v24 = vpop.f32.mrf.mxu2  ;;  %v2616_v25 = vpop.f32.mrf.mxu3 }
 0x1c9   : > { %v2138_v26 = vpop.f32.mrf.mxu0  ;;  %v2298_v27 = vpop.f32.mrf.mxu1 }
 0x1ca   : > { %v4951_v28 = vpack.c.bf16 %v2138_v26, %v2136_v20  ;;  %v5111_v29 = vpack.c.bf16 %v2298_v27, %v2296_v21 }
 0x1cc   : > { %5511 = vst [vmem:[%s5800_s24 + $0x98] sm:$0xff] %v4951_v28  }
 0x1cd   : > { %5543 = vst [vmem:[%s5800_s24 + $0x198] sm:$0xff] %v5111_v29  }
 0x1d0   : > { %v2458_v30 = vpop.f32.mrf.mxu2  ;;  %v2618_v31 = vpop.f32.mrf.mxu3 }
 0x1d1   : > { %v5271_v34 = vpack.c.bf16 %v2458_v30, %v2456_v24  ;;  %v5431_v35 = vpack.c.bf16 %v2618_v31, %v2616_v25  ;;  %v2141_v36 = vpop.f32.mrf.mxu0  ;;  %v2301_v37 = vpop.f32.mrf.mxu1 }
 0x1d3   : > { %5575 = vst [vmem:[%s5800_s24 + $0x298] sm:$0xff] %v5271_v34  }
 0x1d4   : > { %5607 = vst [vmem:[%s5800_s24 + $0x398] sm:$0xff] %v5431_v35   ;;  %4621 = vmatmul.msk.bf16.gmra.mxu0 %vm1647_vm0, %v4751_v32  ;;  %4653 = vmatmul.msk.bf16.gmra.mxu1 %vm1647_vm0, %v4783_v33 }
 0x1d5   : > { %4685 = vmatmul.msk.bf16.gmra.mxu2 %vm1647_vm0, %v4815_v38  ;;  %4717 = vmatmul.msk.bf16.gmra.mxu3 %vm1647_vm0, %v4847_v39 }
 0x1d8   : > { %v2461_v40 = vpop.f32.mrf.mxu2  ;;  %v2621_v41 = vpop.f32.mrf.mxu3 }
 0x1d9   : > { %v2143_v42 = vpop.f32.mrf.mxu0  ;;  %v2303_v43 = vpop.f32.mrf.mxu1 }
 0x1da   : > { %v4956_v44 = vpack.c.bf16 %v2143_v42, %v2141_v36  ;;  %v5116_v45 = vpack.c.bf16 %v2303_v43, %v2301_v37 }
 0x1dc   : > { %5512 = vst [vmem:[%s5800_s24 + $0xa0] sm:$0xff] %v4956_v44  }
 0x1dd   : > { %5544 = vst [vmem:[%s5800_s24 + $0x1a0] sm:$0xff] %v5116_v45  }
 0x1e0   : > { %v2463_v46 = vpop.f32.mrf.mxu2  ;;  %v2623_v47 = vpop.f32.mrf.mxu3 }
 0x1e1   : > { %v5276_v50 = vpack.c.bf16 %v2463_v46, %v2461_v40  ;;  %v5436_v51 = vpack.c.bf16 %v2623_v47, %v2621_v41  ;;  %v2146_v52 = vpop.f32.mrf.mxu0  ;;  %v2306_v53 = vpop.f32.mrf.mxu1 }
 0x1e3   : > { %5576 = vst [vmem:[%s5800_s24 + $0x2a0] sm:$0xff] %v5276_v50  }
 0x1e4   : > { %5608 = vst [vmem:[%s5800_s24 + $0x3a0] sm:$0xff] %v5436_v51   ;;  %4622 = vmatmul.msk.bf16.gmra.mxu0 %vm1647_vm0, %v4752_v48  ;;  %4654 = vmatmul.msk.bf16.gmra.mxu1 %vm1647_vm0, %v4784_v49 }
 0x1e5   : > { %4686 = vmatmul.msk.bf16.gmra.mxu2 %vm1647_vm0, %v4816_v54  ;;  %4718 = vmatmul.msk.bf16.gmra.mxu3 %vm1647_vm0, %v4848_v55 }
 0x1e8   : > { %v2466_v56 = vpop.f32.mrf.mxu2  ;;  %v2626_v57 = vpop.f32.mrf.mxu3 }
 0x1e9   : > { %v2148_v58 = vpop.f32.mrf.mxu0  ;;  %v2308_v59 = vpop.f32.mrf.mxu1 }
 0x1ea   : > { %v4961_v60 = vpack.c.bf16 %v2148_v58, %v2146_v52  ;;  %v5121_v61 = vpack.c.bf16 %v2308_v59, %v2306_v53 }
 0x1ec   : > { %5513 = vst [vmem:[%s5800_s24 + $0xa8] sm:$0xff] %v4961_v60  }
 0x1ed   : > { %5545 = vst [vmem:[%s5800_s24 + $0x1a8] sm:$0xff] %v5121_v61  }
 0x1f0   : > { %v2468_v62 = vpop.f32.mrf.mxu2  ;;  %v2628_v63 = vpop.f32.mrf.mxu3 }
 0x1f1   : > { %v5281_v2 = vpack.c.bf16 %v2468_v62, %v2466_v56  ;;  %v5441_v3 = vpack.c.bf16 %v2628_v63, %v2626_v57  ;;  %v2151_v4 = vpop.f32.mrf.mxu0  ;;  %v2311_v5 = vpop.f32.mrf.mxu1 }
 0x1f3   : > { %5577 = vst [vmem:[%s5800_s24 + $0x2a8] sm:$0xff] %v5281_v2  }
 0x1f4   : > { %5609 = vst [vmem:[%s5800_s24 + $0x3a8] sm:$0xff] %v5441_v3   ;;  %4623 = vmatmul.msk.bf16.gmra.mxu0 %vm1647_vm0, %v4753_v0  ;;  %4655 = vmatmul.msk.bf16.gmra.mxu1 %vm1647_vm0, %v4785_v1 }
 0x1f5   : > { %4687 = vmatmul.msk.bf16.gmra.mxu2 %vm1647_vm0, %v4817_v6  ;;  %4719 = vmatmul.msk.bf16.gmra.mxu3 %vm1647_vm0, %v4849_v7 }
 0x1f8   : > { %v2471_v8 = vpop.f32.mrf.mxu2  ;;  %v2631_v9 = vpop.f32.mrf.mxu3 }
 0x1f9   : > { %v2153_v10 = vpop.f32.mrf.mxu0  ;;  %v2313_v11 = vpop.f32.mrf.mxu1 }
 0x1fa   : > { %v4966_v12 = vpack.c.bf16 %v2153_v10, %v2151_v4  ;;  %v5126_v13 = vpack.c.bf16 %v2313_v11, %v2311_v5 }
 0x1fc   : > { %5514 = vst [vmem:[%s5800_s24 + $0xb0] sm:$0xff] %v4966_v12  }
 0x1fd   : > { %5546 = vst [vmem:[%s5800_s24 + $0x1b0] sm:$0xff] %v5126_v13  }
 0x200   : > { %v2473_v14 = vpop.f32.mrf.mxu2  ;;  %v2633_v15 = vpop.f32.mrf.mxu3 }
 0x201   : > { %v5286_v18 = vpack.c.bf16 %v2473_v14, %v2471_v8  ;;  %v5446_v19 = vpack.c.bf16 %v2633_v15, %v2631_v9  ;;  %v2156_v20 = vpop.f32.mrf.mxu0  ;;  %v2316_v21 = vpop.f32.mrf.mxu1 }
 0x203   : > { %5578 = vst [vmem:[%s5800_s24 + $0x2b0] sm:$0xff] %v5286_v18  }
 0x204   : > { %5610 = vst [vmem:[%s5800_s24 + $0x3b0] sm:$0xff] %v5446_v19   ;;  %4624 = vmatmul.msk.bf16.gmra.mxu0 %vm1647_vm0, %v4754_v16  ;;  %4656 = vmatmul.msk.bf16.gmra.mxu1 %vm1647_vm0, %v4786_v17 }
 0x205   : > { %4688 = vmatmul.msk.bf16.gmra.mxu2 %vm1647_vm0, %v4818_v22  ;;  %4720 = vmatmul.msk.bf16.gmra.mxu3 %vm1647_vm0, %v4850_v23 }
 0x208   : > { %v2476_v24 = vpop.f32.mrf.mxu2  ;;  %v2636_v25 = vpop.f32.mrf.mxu3 }
 0x209   : > { %v2158_v26 = vpop.f32.mrf.mxu0  ;;  %v2318_v27 = vpop.f32.mrf.mxu1 }
 0x20a   : > { %v4971_v28 = vpack.c.bf16 %v2158_v26, %v2156_v20  ;;  %v5131_v29 = vpack.c.bf16 %v2318_v27, %v2316_v21 }
 0x20c   : > { %5515 = vst [vmem:[%s5800_s24 + $0xb8] sm:$0xff] %v4971_v28  }
 0x20d   : > { %5547 = vst [vmem:[%s5800_s24 + $0x1b8] sm:$0xff] %v5131_v29  }
 0x210   : > { %v2478_v30 = vpop.f32.mrf.mxu2  ;;  %v2638_v31 = vpop.f32.mrf.mxu3 }
 0x211   : > { %v5291_v32 = vpack.c.bf16 %v2478_v30, %v2476_v24  ;;  %v5451_v33 = vpack.c.bf16 %v2638_v31, %v2636_v25  ;;  %v2161_v34 = vpop.f32.mrf.mxu0  ;;  %v2321_v35 = vpop.f32.mrf.mxu1 }
 0x213   : > { %5579 = vst [vmem:[%s5800_s24 + $0x2b8] sm:$0xff] %v5291_v32  }
 0x214   : > { %5611 = vst [vmem:[%s5800_s24 + $0x3b8] sm:$0xff] %v5451_v33  }
 0x218   : > { %v2481_v36 = vpop.f32.mrf.mxu2  ;;  %v2641_v37 = vpop.f32.mrf.mxu3 }
 0x219   : > { %v2163_v38 = vpop.f32.mrf.mxu0  ;;  %v2323_v39 = vpop.f32.mrf.mxu1 }
 0x21a   : > { %v4976_v40 = vpack.c.bf16 %v2163_v38, %v2161_v34  ;;  %v5136_v41 = vpack.c.bf16 %v2323_v39, %v2321_v35 }
 0x21c   : > { %5516 = vst [vmem:[%s5800_s24 + $0xc0] sm:$0xff] %v4976_v40  }
 0x21d   : > { %5548 = vst [vmem:[%s5800_s24 + $0x1c0] sm:$0xff] %v5136_v41  }
 0x220   : > { %v2483_v42 = vpop.f32.mrf.mxu2  ;;  %v2643_v43 = vpop.f32.mrf.mxu3 }
 0x221   : > { %v5296_v44 = vpack.c.bf16 %v2483_v42, %v2481_v36  ;;  %v5456_v45 = vpack.c.bf16 %v2643_v43, %v2641_v37  ;;  %v2166_v46 = vpop.f32.mrf.mxu0  ;;  %v2326_v47 = vpop.f32.mrf.mxu1 }
 0x223   : > { %5580 = vst [vmem:[%s5800_s24 + $0x2c0] sm:$0xff] %v5296_v44  }
 0x224   : > { %5612 = vst [vmem:[%s5800_s24 + $0x3c0] sm:$0xff] %v5456_v45  }
 0x228   : > { %v2486_v48 = vpop.f32.mrf.mxu2  ;;  %v2646_v49 = vpop.f32.mrf.mxu3 }
 0x229   : > { %v2168_v50 = vpop.f32.mrf.mxu0  ;;  %v2328_v51 = vpop.f32.mrf.mxu1 }
 0x22a   : > { %v4981_v52 = vpack.c.bf16 %v2168_v50, %v2166_v46  ;;  %v5141_v53 = vpack.c.bf16 %v2328_v51, %v2326_v47 }
 0x22c   : > { %5517 = vst [vmem:[%s5800_s24 + $0xc8] sm:$0xff] %v4981_v52  }
 0x22d   : > { %5549 = vst [vmem:[%s5800_s24 + $0x1c8] sm:$0xff] %v5141_v53  }
 0x230   : > { %v2488_v54 = vpop.f32.mrf.mxu2  ;;  %v2648_v55 = vpop.f32.mrf.mxu3 }
 0x231   : > { %v5301_v56 = vpack.c.bf16 %v2488_v54, %v2486_v48  ;;  %v5461_v57 = vpack.c.bf16 %v2648_v55, %v2646_v49  ;;  %v2171_v58 = vpop.f32.mrf.mxu0  ;;  %v2331_v59 = vpop.f32.mrf.mxu1 }
 0x233   : > { %5581 = vst [vmem:[%s5800_s24 + $0x2c8] sm:$0xff] %v5301_v56  }
 0x234   : > { %5613 = vst [vmem:[%s5800_s24 + $0x3c8] sm:$0xff] %v5461_v57  }
 0x238   : > { %v2491_v60 = vpop.f32.mrf.mxu2  ;;  %v2651_v61 = vpop.f32.mrf.mxu3 }
 0x239   : > { %v2173_v62 = vpop.f32.mrf.mxu0  ;;  %v2333_v63 = vpop.f32.mrf.mxu1 }
 0x23a   : > { %v4986_v0 = vpack.c.bf16 %v2173_v62, %v2171_v58  ;;  %v5146_v1 = vpack.c.bf16 %v2333_v63, %v2331_v59 }
 0x23c   : > { %5518 = vst [vmem:[%s5800_s24 + $0xd0] sm:$0xff] %v4986_v0  }
 0x23d   : > { %5550 = vst [vmem:[%s5800_s24 + $0x1d0] sm:$0xff] %v5146_v1  }
 0x240   : > { %v2493_v2 = vpop.f32.mrf.mxu2  ;;  %v2653_v3 = vpop.f32.mrf.mxu3 }
 0x241   : > { %v5306_v4 = vpack.c.bf16 %v2493_v2, %v2491_v60  ;;  %v5466_v5 = vpack.c.bf16 %v2653_v3, %v2651_v61  ;;  %v2176_v6 = vpop.f32.mrf.mxu0  ;;  %v2336_v7 = vpop.f32.mrf.mxu1 }
 0x243   : > { %5582 = vst [vmem:[%s5800_s24 + $0x2d0] sm:$0xff] %v5306_v4  }
 0x244   : > { %5614 = vst [vmem:[%s5800_s24 + $0x3d0] sm:$0xff] %v5466_v5  }
 0x248   : > { %v2496_v8 = vpop.f32.mrf.mxu2  ;;  %v2656_v9 = vpop.f32.mrf.mxu3 }
 0x249   : > { %v2178_v10 = vpop.f32.mrf.mxu0  ;;  %v2338_v11 = vpop.f32.mrf.mxu1 }
 0x24a   : > { %v4991_v12 = vpack.c.bf16 %v2178_v10, %v2176_v6  ;;  %v5151_v13 = vpack.c.bf16 %v2338_v11, %v2336_v7 }
 0x24c   : > { %5519 = vst [vmem:[%s5800_s24 + $0xd8] sm:$0xff] %v4991_v12  }
 0x24d   : > { %5551 = vst [vmem:[%s5800_s24 + $0x1d8] sm:$0xff] %v5151_v13  }
 0x250   : > { %v2498_v14 = vpop.f32.mrf.mxu2  ;;  %v2658_v15 = vpop.f32.mrf.mxu3 }
 0x251   : > { %v5311_v16 = vpack.c.bf16 %v2498_v14, %v2496_v8  ;;  %v5471_v17 = vpack.c.bf16 %v2658_v15, %v2656_v9  ;;  %v2181_v18 = vpop.f32.mrf.mxu0  ;;  %v2341_v19 = vpop.f32.mrf.mxu1 }
 0x253   : > { %5583 = vst [vmem:[%s5800_s24 + $0x2d8] sm:$0xff] %v5311_v16  }
 0x254   : > { %5615 = vst [vmem:[%s5800_s24 + $0x3d8] sm:$0xff] %v5471_v17  }
 0x258   : > { %v2501_v20 = vpop.f32.mrf.mxu2  ;;  %v2661_v21 = vpop.f32.mrf.mxu3 }
 0x259   : > { %v2183_v22 = vpop.f32.mrf.mxu0  ;;  %v2343_v23 = vpop.f32.mrf.mxu1 }
 0x25a   : > { %v4996_v24 = vpack.c.bf16 %v2183_v22, %v2181_v18  ;;  %v5156_v25 = vpack.c.bf16 %v2343_v23, %v2341_v19 }
 0x25c   : > { %5520 = vst [vmem:[%s5800_s24 + $0xe0] sm:$0xff] %v4996_v24  }
 0x25d   : > { %5552 = vst [vmem:[%s5800_s24 + $0x1e0] sm:$0xff] %v5156_v25  }
 0x260   : > { %v2503_v26 = vpop.f32.mrf.mxu2  ;;  %v2663_v27 = vpop.f32.mrf.mxu3 }
 0x261   : > { %v5316_v28 = vpack.c.bf16 %v2503_v26, %v2501_v20  ;;  %v5476_v29 = vpack.c.bf16 %v2663_v27, %v2661_v21  ;;  %v2186_v30 = vpop.f32.mrf.mxu0  ;;  %v2346_v31 = vpop.f32.mrf.mxu1 }
 0x263   : > { %5584 = vst [vmem:[%s5800_s24 + $0x2e0] sm:$0xff] %v5316_v28  }
 0x264   : > { %5616 = vst [vmem:[%s5800_s24 + $0x3e0] sm:$0xff] %v5476_v29  }
 0x268   : > { %v2506_v32 = vpop.f32.mrf.mxu2  ;;  %v2666_v33 = vpop.f32.mrf.mxu3 }
 0x269   : > { %v2188_v34 = vpop.f32.mrf.mxu0  ;;  %v2348_v35 = vpop.f32.mrf.mxu1 }
 0x26a   : > { %v5001_v36 = vpack.c.bf16 %v2188_v34, %v2186_v30  ;;  %v5161_v37 = vpack.c.bf16 %v2348_v35, %v2346_v31 }
 0x26c   : > { %5521 = vst [vmem:[%s5800_s24 + $0xe8] sm:$0xff] %v5001_v36  }
 0x26d   : > { %5553 = vst [vmem:[%s5800_s24 + $0x1e8] sm:$0xff] %v5161_v37  }
 0x270   : > { %v2508_v38 = vpop.f32.mrf.mxu2  ;;  %v2668_v39 = vpop.f32.mrf.mxu3 }
 0x271   : > { %v5321_v40 = vpack.c.bf16 %v2508_v38, %v2506_v32  ;;  %v5481_v41 = vpack.c.bf16 %v2668_v39, %v2666_v33  ;;  %v2191_v42 = vpop.f32.mrf.mxu0  ;;  %v2351_v43 = vpop.f32.mrf.mxu1 }
 0x273   : > { %5585 = vst [vmem:[%s5800_s24 + $0x2e8] sm:$0xff] %v5321_v40  }
 0x274   : > { %5617 = vst [vmem:[%s5800_s24 + $0x3e8] sm:$0xff] %v5481_v41  }
 0x278   : > { %v2511_v44 = vpop.f32.mrf.mxu2  ;;  %v2671_v45 = vpop.f32.mrf.mxu3 }
 0x279   : > { %v2193_v46 = vpop.f32.mrf.mxu0  ;;  %v2353_v47 = vpop.f32.mrf.mxu1 }
 0x27a   : > { %v5006_v48 = vpack.c.bf16 %v2193_v46, %v2191_v42  ;;  %v5166_v49 = vpack.c.bf16 %v2353_v47, %v2351_v43 }
 0x27c   : > { %5522 = vst [vmem:[%s5800_s24 + $0xf0] sm:$0xff] %v5006_v48  }
 0x27d   : > { %5554 = vst [vmem:[%s5800_s24 + $0x1f0] sm:$0xff] %v5166_v49  }
 0x280   : > { %v2513_v50 = vpop.f32.mrf.mxu2  ;;  %v2673_v51 = vpop.f32.mrf.mxu3 }
 0x281   : > { %v5326_v52 = vpack.c.bf16 %v2513_v50, %v2511_v44  ;;  %v5486_v53 = vpack.c.bf16 %v2673_v51, %v2671_v45  ;;  %v2196_v54 = vpop.f32.mrf.mxu0  ;;  %v2356_v55 = vpop.f32.mrf.mxu1 }
 0x283   : > { %5586 = vst [vmem:[%s5800_s24 + $0x2f0] sm:$0xff] %v5326_v52  }
 0x284   : > { %5618 = vst [vmem:[%s5800_s24 + $0x3f0] sm:$0xff] %v5486_v53  }
 0x288   : > { %v2516_v56 = vpop.f32.mrf.mxu2  ;;  %v2676_v57 = vpop.f32.mrf.mxu3 }
 0x289   : > { %v2198_v58 = vpop.f32.mrf.mxu0  ;;  %v2358_v59 = vpop.f32.mrf.mxu1 }
 0x28a   : > { %v5011_v60 = vpack.c.bf16 %v2198_v58, %v2196_v54  ;;  %v5171_v61 = vpack.c.bf16 %v2358_v59, %v2356_v55 }
 0x28c   : > { %5523 = vst [vmem:[%s5800_s24 + $0xf8] sm:$0xff] %v5011_v60  }
 0x28d   : > { %5555 = vst [vmem:[%s5800_s24 + $0x1f8] sm:$0xff] %v5171_v61  }
 0x290   : > { %v2518_v62 = vpop.f32.mrf.mxu2  ;;  %v2678_v63 = vpop.f32.mrf.mxu3 }
 0x291   : > { %v5331_v0 = vpack.c.bf16 %v2518_v62, %v2516_v56  ;;  %v5491_v1 = vpack.c.bf16 %v2678_v63, %v2676_v57 }
 0x293   : > { %5587 = vst [vmem:[%s5800_s24 + $0x2f8] sm:$0xff] %v5331_v0  }
 0x294   : > { %5619 = vst [vmem:[%s5800_s24 + $0x3f8] sm:$0xff] %v5491_v1  }
 0x295 PF: > { %s12_s11 = sadd.s32 1, %s5672_s11   ;;  %s6126_s9 = smov %s5668_s10 }
 0x296   : > { %p9_p5 = scmp.ge.s32.totalorder %s12_s11, 20   ;;  %s6127_s10 = smov %s6129_s12 }
 0x298   :  { %11 = sbr.rel (!%p9_p5) target bundleno = 2 (0x2), region = 69 }

</bundles_post_ra>
